<compile_context>
chip_gen: v6e
topology: v6e:2x2x1
jax: 0.10.0
libtpu: 0.0.40
codegen_flags: <defaults>
</compile_context>

<pallas_src>
import functools
import math

import jax
import jax.numpy as jnp
from jax.experimental import pallas as pl
from jax.experimental.pallas import tpu as pltpu


# ---------------------------------------------------------------------------
# Fused kernel: all temporal blocks + dual attention + linear head
# ---------------------------------------------------------------------------

def _fused_tcn_attention_kernel(*refs, meta):
    blocks = meta["blocks"]
    L = len(blocks)
    bf16 = jnp.bfloat16

    x_ref = refs[0]
    blk_refs = [refs[1 + 4 * l: 1 + 4 * (l + 1)] for l in range(L)]
    hidx = 1 + 4 * L
    wqkv1_ref, bqkv1_ref, wqkvo2_ref, bqkvo2_ref, bo_ref = refs[hidx:hidx + 5]
    out_ref = refs[hidx + 5]
    pad_refs = refs[hidx + 6:]

    Bt, T, _ = x_ref.shape
    M = Bt * T

    # One-time zeroing of the causal left-pad rows; the scratch persists across
    # grid steps and rows [pad_al, pad_al+T) are overwritten every step.
    @pl.when(pl.program_id(0) == 0)
    def _zero_pads():
        for l, bm in enumerate(blocks):
            pa = bm["pad_al"]
            if pa > 0:
                for s in (pad_refs[2 * l], pad_refs[2 * l + 1]):
                    s[:, pl.ds(0, pa), :] = jnp.zeros(
                        (Bt, pa, s.shape[2]), jnp.float32)

    # ------------------------- temporal blocks ------------------------------
    h = x_ref[...]                                       # (Bt, T, Cin_p) f32
    for l, bm in enumerate(blocks):
        K, d, pad, pa = bm["ksize"], bm["dilation"], bm["pad"], bm["pad_al"]
        cin_p, cout_p = bm["cin_p"], bm["cout_p"]
        w1_ref, b1_ref, w2_ref, b2_ref = blk_refs[l]
        xp1, xp2 = pad_refs[2 * l], pad_refs[2 * l + 1]

        # conv1 (+ fused 1x1 downsample columns): causal pad in VMEM, then K
        # accumulating tap matmuls on the batch-folded (Bt*T, Cin_p) operand.
        xp1[:, pl.ds(pa, T), :] = h                      # sublane-aligned store
        acc1 = None
        for k in range(K):
            tap = xp1[:, pl.ds(pa - pad + k * d, T), :]
            tap = tap.reshape(M, cin_p).astype(bf16)
            part = jnp.dot(tap, w1_ref[pl.ds(k * cin_p, cin_p), :],
                           preferred_element_type=jnp.float32)
            acc1 = part if acc1 is None else acc1 + part
        acc1 = acc1 + b1_ref[...]
        h1 = jnp.maximum(acc1[:, :cout_p], 0.0)          # (M, Cout_p) f32

        if bm["has_downsample"]:
            res = acc1[:, cout_p:]                       # downsample rode on conv1
        else:
            res = h.reshape(M, cout_p)                   # exact f32 identity skip

        # conv2 (input stays in VMEM)
        xp2[:, pl.ds(pa, T), :] = h1.reshape(Bt, T, cout_p)
        acc2 = None
        for k in range(K):
            tap = xp2[:, pl.ds(pa - pad + k * d, T), :]
            tap = tap.reshape(M, cout_p).astype(bf16)
            part = jnp.dot(tap, w2_ref[pl.ds(k * cout_p, cout_p), :],
                           preferred_element_type=jnp.float32)
            acc2 = part if acc2 is None else acc2 + part
        h2 = jnp.maximum(acc2 + b2_ref[...], 0.0)

        h = jnp.maximum(h2 + res, 0.0).reshape(Bt, T, cout_p)

    # ------------------------- attention 1 (full) ---------------------------
    H = wqkv1_ref.shape[0]                               # padded hidden size
    h2d = h.reshape(M, H).astype(bf16)
    qkv = jnp.dot(h2d, wqkv1_ref[...],
                  preferred_element_type=jnp.float32) + bqkv1_ref[...]
    # 1/sqrt(hidden) is already folded into the Q columns at packing time.
    q1 = qkv[:, :H].reshape(Bt, T, H).astype(bf16)
    k1 = qkv[:, H:2 * H].reshape(Bt, T, H).astype(bf16)
    v1 = qkv[:, 2 * H:].reshape(Bt, T, H).astype(bf16)

    s1 = jnp.einsum('bqd,bkd->bqk', q1, k1, preferred_element_type=jnp.float32)
    s1 = s1 - jnp.max(s1, axis=-1, keepdims=True)        # stable softmax (dim=-1)
    p1 = jnp.exp(s1)
    p1 = p1 * pl.reciprocal(jnp.sum(p1, axis=-1, keepdims=True), approx=True)
    y1 = jnp.einsum('bqk,bkd->bqd', p1.astype(bf16), v1,
                    preferred_element_type=jnp.float32)  # (Bt, T, H) f32

    # --------- attention 2 (fused Q/K/(V·Wo) projection; last-row query) ----
    y1b2d = y1.astype(bf16).reshape(M, H)
    qkvo2 = jnp.dot(y1b2d, wqkvo2_ref[...],
                    preferred_element_type=jnp.float32) + bqkvo2_ref[...]
    o_p = bo_ref.shape[1]
    q2 = qkvo2[:, :H].reshape(Bt, T, H)[:, T - 1:T, :].astype(bf16)   # (Bt,1,H)
    k2 = qkvo2[:, H:2 * H].reshape(Bt, T, H).astype(bf16)             # (Bt,T,H)
    v2o = qkvo2[:, 2 * H:].reshape(Bt, T, o_p).astype(bf16)           # (Bt,T,O)

    s2 = jnp.einsum('bqd,bkd->bqk', q2, k2, preferred_element_type=jnp.float32)
    s2 = s2 - jnp.max(s2, axis=-1, keepdims=True)
    p2 = jnp.exp(s2)
    p2 = p2 * pl.reciprocal(jnp.sum(p2, axis=-1, keepdims=True), approx=True)

    out = jnp.einsum('bqk,bko->bqo', p2.astype(bf16), v2o,
                     preferred_element_type=jnp.float32) + bo_ref[...]  # (Bt,1,O_p)
    out_ref[...] = out


# ---------------------------------------------------------------------------
# pallas_call wrapper (whole forward pass, eval mode)
# ---------------------------------------------------------------------------

def tcn_with_attention_forward(params, x, batch_tile=None):
    # x: (B, T, input_size) — same convention as the PyTorch module input.
    B, T, cin = x.shape
    blocks = params["blocks"]
    head = params["head"]
    cin_p = params["cin_p"]
    o_p = head["o_p"]

    if batch_tile is None:
        # Fold enough sequences into the matmul M dim to approach a 128-row
        # MXU tile; for larger B this also yields a multi-step parallel grid.
        batch_tile = max(1, min(B, max(1, 128 // max(T, 1))))
    Bt = batch_tile
    n_tiles = (B + Bt - 1) // Bt
    B_pad = n_tiles * Bt

    # Lane-pad channels and (if needed) zero-pad the batch to a tile multiple.
    xp = jnp.pad(x.astype(jnp.float32),
                 ((0, B_pad - B), (0, 0), (0, cin_p - cin)))

    def const2d(shape):
        return pl.BlockSpec(shape, lambda i: (0, 0))

    operands = [xp]
    in_specs = [pl.BlockSpec((Bt, T, cin_p), lambda i: (i, 0, 0))]
    blocks_meta = []
    for blk in blocks:
        for name in ("w1", "b1", "w2", "b2"):
            w = blk[name]
            operands.append(w)
            in_specs.append(const2d(w.shape))
        blocks_meta.append(blk["meta"])
    for name in ("wqkv1", "bqkv1", "wqkvo2", "bqkvo2", "bo"):
        w = head[name]
        operands.append(w)
        in_specs.append(const2d(w.shape))

    scratch_shapes = []
    for bm in blocks_meta:
        tpad = T + bm["pad_al"]
        scratch_shapes.append(pltpu.VMEM((Bt, tpad, bm["cin_p"]), jnp.float32))
        scratch_shapes.append(pltpu.VMEM((Bt, tpad, bm["cout_p"]), jnp.float32))

    kern = functools.partial(_fused_tcn_attention_kernel,
                             meta={"blocks": blocks_meta})

    out = pl.pallas_call(
        kern,
        out_shape=jax.ShapeDtypeStruct((B_pad, 1, o_p), jnp.float32),
        grid=(n_tiles,),
        in_specs=in_specs,
        out_specs=pl.BlockSpec((Bt, 1, o_p), lambda i: (i, 0, 0)),
        scratch_shapes=scratch_shapes,
        compiler_params=pltpu.CompilerParams(dimension_semantics=("parallel",)),
    )(*operands)

    return out.reshape(B_pad, o_p)[:B, :head["out_dim"]]


# ---------------------------------------------------------------------------
# Parameter init + packing (deterministic, synthetic; matches module shapes)
# ---------------------------------------------------------------------------

def _rup(n, m=128):
    return ((n + m - 1) // m) * m


def _pad_to(a, shape):
    return jnp.pad(a, [(0, s - d) for d, s in zip(a.shape, shape)])


def init_params(key, input_size, output_size, num_channels, kernel_size):
    f32, bf16 = jnp.float32, jnp.bfloat16
    blocks = []
    in_ch = input_size
    for i, out_ch in enumerate(num_channels):
        key, k1, k2, k3, k4, k5, k6 = jax.random.split(key, 7)
        cin_p, cout_p = _rup(in_ch), _rup(out_ch)
        dilation = 2 ** i
        pad = (kernel_size - 1) * dilation
        pad_al = ((pad + 7) // 8) * 8          # sublane-aligned left pad
        s1 = 1.0 / math.sqrt(in_ch * kernel_size)
        s2 = 1.0 / math.sqrt(out_ch * kernel_size)
        # Conv1d weight (Cout, Cin, K) in PyTorch -> stored per tap as (Cin, Cout).
        w1 = jax.random.normal(k1, (kernel_size, in_ch, out_ch), f32) * s1
        b1 = jax.random.normal(k2, (1, out_ch), f32) * s1
        w2 = jax.random.normal(k3, (kernel_size, out_ch, out_ch), f32) * s2
        b2 = jax.random.normal(k4, (1, out_ch), f32) * s2
        has_down = in_ch != out_ch
        if has_down:
            # Fuse the 1x1 downsample into the last conv1 tap (that tap reads x
            # itself), occupying extra output columns [cout_p : 2*cout_p).
            sd = 1.0 / math.sqrt(in_ch)
            wd = jax.random.normal(k5, (in_ch, out_ch), f32) * sd
            bd = jax.random.normal(k6, (1, out_ch), f32) * sd
            n1 = 2 * cout_p
            taps = []
            for k in range(kernel_size):
                tap = jnp.zeros((cin_p, n1), f32)
                tap = tap.at[:in_ch, :out_ch].set(w1[k])
                if k == kernel_size - 1:
                    tap = tap.at[:in_ch, cout_p:cout_p + out_ch].set(wd)
                taps.append(tap)
            w1p = jnp.concatenate(taps, axis=0)
            b1p = (jnp.zeros((1, n1), f32)
                   .at[:, :out_ch].set(b1)
                   .at[:, cout_p:cout_p + out_ch].set(bd))
        else:
            n1 = cout_p
            w1p = jnp.concatenate([_pad_to(w1[k], (cin_p, cout_p))
                                   for k in range(kernel_size)], axis=0)
            b1p = _pad_to(b1, (1, cout_p))
        w2p = jnp.concatenate([_pad_to(w2[k], (cout_p, cout_p))
                               for k in range(kernel_size)], axis=0)
        b2p = _pad_to(b2, (1, cout_p))
        blocks.append({
            "w1": w1p.astype(bf16), "b1": b1p,
            "w2": w2p.astype(bf16), "b2": b2p,
            "meta": {"ksize": kernel_size, "dilation": dilation, "pad": pad,
                     "pad_al": pad_al, "cin_p": cin_p, "cout_p": cout_p,
                     "has_downsample": has_down},
        })
        in_ch = out_ch

    H = num_channels[-1]
    h_p, o_p = _rup(H), _rup(output_size)
    scale = 1.0 / math.sqrt(H)                 # PyTorch divides scores by sqrt(hidden)

    def lin(k, fan_in, shape_w, shape_b):
        kw, kb = jax.random.split(k)
        s = 1.0 / math.sqrt(fan_in)
        return (jax.random.normal(kw, shape_w, f32) * s,
                jax.random.normal(kb, shape_b, f32) * s)

    key, kq1, kk1, kv1, kq2, kk2, kv2, ko = jax.random.split(key, 8)
    wq1, bq1 = lin(kq1, H, (H, H), (1, H))
    wk1, bk1 = lin(kk1, H, (H, H), (1, H))
    wv1, bv1 = lin(kv1, H, (H, H), (1, H))
    wq2, bq2 = lin(kq2, H, (H, H), (1, H))
    wk2, bk2 = lin(kk2, H, (H, H), (1, H))
    wv2, bv2 = lin(kv2, H, (H, H), (1, H))
    wo, bo = lin(ko, H, (H, output_size), (1, output_size))

    # Fold the 1/sqrt(H) softmax scale into both Q projections (zero runtime cost).
    wq1s, bq1s = wq1 * scale, bq1 * scale
    wq2s, bq2s = wq2 * scale, bq2 * scale
    # Compose attention-2's value projection with the output linear (exact, by
    # associativity): P2@(Y1·Wv2+bv2)·Wo + bo == P2@(Y1·(Wv2·Wo)+bv2·Wo) + bo.
    wvo2 = wv2 @ wo
    bvo2 = bv2 @ wo

    head = {
        "wqkv1": jnp.concatenate([_pad_to(w, (h_p, h_p)) for w in (wq1s, wk1, wv1)],
                                 axis=1).astype(bf16),
        "bqkv1": jnp.concatenate([_pad_to(b, (1, h_p)) for b in (bq1s, bk1, bv1)],
                                 axis=1),
        "wqkvo2": jnp.concatenate([_pad_to(wq2s, (h_p, h_p)),
                                   _pad_to(wk2, (h_p, h_p)),
                                   _pad_to(wvo2, (h_p, o_p))], axis=1).astype(bf16),
        "bqkvo2": jnp.concatenate([_pad_to(bq2s, (1, h_p)),
                                   _pad_to(bk2, (1, h_p)),
                                   _pad_to(bvo2, (1, o_p))], axis=1),
        "bo": _pad_to(bo, (1, o_p)),
        "o_p": o_p, "out_dim": output_size,
    }
    return {"blocks": blocks, "head": head, "cin_p": _rup(input_size)}


if __name__ == "__main__":
    key = jax.random.PRNGKey(0)
    B, T = 2, 16
    input_size, output_size = 4, 3
    num_channels = [16, 16]        # block0: 4->16 (1x1 downsample), block1: identity skip
    kernel_size = 2

    pkey, xkey = jax.random.split(key)
    params = init_params(pkey, input_size, output_size, num_channels, kernel_size)
    x = jax.random.normal(xkey, (B, T, input_size), jnp.float32)

    out = tcn_with_attention_forward(params, x)
    jax.block_until_ready(out)
    assert out.shape == (B, output_size), out.shape
    print("KERNEL_OK")
</pallas_src>

<mosaic_0001>
module attributes {stable_mosaic.version = 11 : i64} {
  func.func @_fused_tcn_attention_kernel(%arg0: i32, %arg1: memref<2x16x128xf32, #tpu.memory_space<vmem>>, %arg2: memref<256x256xbf16, #tpu.memory_space<vmem>>, %arg3: memref<1x256xf32, #tpu.memory_space<vmem>>, %arg4: memref<256x128xbf16, #tpu.memory_space<vmem>>, %arg5: memref<1x128xf32, #tpu.memory_space<vmem>>, %arg6: memref<256x128xbf16, #tpu.memory_space<vmem>>, %arg7: memref<1x128xf32, #tpu.memory_space<vmem>>, %arg8: memref<256x128xbf16, #tpu.memory_space<vmem>>, %arg9: memref<1x128xf32, #tpu.memory_space<vmem>>, %arg10: memref<128x384xbf16, #tpu.memory_space<vmem>>, %arg11: memref<1x384xf32, #tpu.memory_space<vmem>>, %arg12: memref<128x384xbf16, #tpu.memory_space<vmem>>, %arg13: memref<1x384xf32, #tpu.memory_space<vmem>>, %arg14: memref<1x128xf32, #tpu.memory_space<vmem>>, %arg15: memref<2x1x128xf32, #tpu.memory_space<vmem>>, %arg16: memref<2x24x128xf32, #tpu.memory_space<vmem>>, %arg17: memref<2x24x128xf32, #tpu.memory_space<vmem>>, %arg18: memref<2x24x128xf32, #tpu.memory_space<vmem>>, %arg19: memref<2x24x128xf32, #tpu.memory_space<vmem>>) attributes {dimension_semantics = [#tpu.dimension_semantics<parallel>], iteration_bounds = array<i64: 1>, scalar_prefetch = 0 : i64, scratch_operands = 4 : i64, tpu.core_type = #tpu.core_type<tc>, window_params = [{transform_indices = @transform_0, window_bounds = array<i64: 2, 16, 128>}, {pipeline_mode = #tpu.pipeline_mode<synchronous>, transform_indices = @transform_1, window_bounds = array<i64: 256, 256>}, {pipeline_mode = #tpu.pipeline_mode<synchronous>, transform_indices = @transform_2, window_bounds = array<i64: 1, 256>}, {pipeline_mode = #tpu.pipeline_mode<synchronous>, transform_indices = @transform_3, window_bounds = array<i64: 256, 128>}, {pipeline_mode = #tpu.pipeline_mode<synchronous>, transform_indices = @transform_4, window_bounds = array<i64: 1, 128>}, {pipeline_mode = #tpu.pipeline_mode<synchronous>, transform_indices = @transform_5, window_bounds = array<i64: 256, 128>}, {pipeline_mode = #tpu.pipeline_mode<synchronous>, transform_indices = @transform_6, window_bounds = array<i64: 1, 128>}, {pipeline_mode = #tpu.pipeline_mode<synchronous>, transform_indices = @transform_7, window_bounds = array<i64: 256, 128>}, {pipeline_mode = #tpu.pipeline_mode<synchronous>, transform_indices = @transform_8, window_bounds = array<i64: 1, 128>}, {pipeline_mode = #tpu.pipeline_mode<synchronous>, transform_indices = @transform_9, window_bounds = array<i64: 128, 384>}, {pipeline_mode = #tpu.pipeline_mode<synchronous>, transform_indices = @transform_10, window_bounds = array<i64: 1, 384>}, {pipeline_mode = #tpu.pipeline_mode<synchronous>, transform_indices = @transform_11, window_bounds = array<i64: 128, 384>}, {pipeline_mode = #tpu.pipeline_mode<synchronous>, transform_indices = @transform_12, window_bounds = array<i64: 1, 384>}, {pipeline_mode = #tpu.pipeline_mode<synchronous>, transform_indices = @transform_13, window_bounds = array<i64: 1, 128>}, {transform_indices = @transform_14, window_bounds = array<i64: 2, 1, 128>}]} {
    %c0_i32 = arith.constant 0 : i32
    %0 = arith.cmpi eq, %arg0, %c0_i32 : i32
    %1 = arith.extui %0 : i1 to i32
    %c0_i32_0 = arith.constant 0 : i32
    %2 = arith.cmpi ne, %1, %c0_i32_0 : i32
    scf.if %2 {
      %cst_95 = arith.constant 0.000000e+00 : f32
      %149 = vector.broadcast %cst_95 : f32 to vector<2x8x128xf32>
      %c0_96 = arith.constant 0 : index
      %c0_97 = arith.constant 0 : index
      %c0_98 = arith.constant 0 : index
      %150 = vector.load %arg16[%c0_96, %c0_97, %c0_98] : memref<2x24x128xf32, #tpu.memory_space<vmem>>, vector<2x8x128xf32>
      tpu.vector_store %arg16[%c0_96, %c0_97, %c0_98], %149 {strides = array<i32>} : memref<2x24x128xf32, #tpu.memory_space<vmem>>, vector<2x8x128xf32>,
      %cst_99 = arith.constant 0.000000e+00 : f32
      %151 = vector.broadcast %cst_99 : f32 to vector<2x8x128xf32>
      %c0_100 = arith.constant 0 : index
      %c0_101 = arith.constant 0 : index
      %c0_102 = arith.constant 0 : index
      %152 = vector.load %arg17[%c0_100, %c0_101, %c0_102] : memref<2x24x128xf32, #tpu.memory_space<vmem>>, vector<2x8x128xf32>
      tpu.vector_store %arg17[%c0_100, %c0_101, %c0_102], %151 {strides = array<i32>} : memref<2x24x128xf32, #tpu.memory_space<vmem>>, vector<2x8x128xf32>,
      %cst_103 = arith.constant 0.000000e+00 : f32
      %153 = vector.broadcast %cst_103 : f32 to vector<2x8x128xf32>
      %c0_104 = arith.constant 0 : index
      %c0_105 = arith.constant 0 : index
      %c0_106 = arith.constant 0 : index
      %154 = vector.load %arg18[%c0_104, %c0_105, %c0_106] : memref<2x24x128xf32, #tpu.memory_space<vmem>>, vector<2x8x128xf32>
      tpu.vector_store %arg18[%c0_104, %c0_105, %c0_106], %153 {strides = array<i32>} : memref<2x24x128xf32, #tpu.memory_space<vmem>>, vector<2x8x128xf32>,
      %cst_107 = arith.constant 0.000000e+00 : f32
      %155 = vector.broadcast %cst_107 : f32 to vector<2x8x128xf32>
      %c0_108 = arith.constant 0 : index
      %c0_109 = arith.constant 0 : index
      %c0_110 = arith.constant 0 : index
      %156 = vector.load %arg19[%c0_108, %c0_109, %c0_110] : memref<2x24x128xf32, #tpu.memory_space<vmem>>, vector<2x8x128xf32>
      tpu.vector_store %arg19[%c0_108, %c0_109, %c0_110], %155 {strides = array<i32>} : memref<2x24x128xf32, #tpu.memory_space<vmem>>, vector<2x8x128xf32>,
    } else {
    }
    %c0 = arith.constant 0 : index
    %c0_1 = arith.constant 0 : index
    %c0_2 = arith.constant 0 : index
    %3 = vector.load %arg1[%c0, %c0_1, %c0_2] : memref<2x16x128xf32, #tpu.memory_space<vmem>>, vector<2x16x128xf32>
    %c0_3 = arith.constant 0 : index
    %c8 = arith.constant 8 : index
    %c0_4 = arith.constant 0 : index
    %4 = vector.load %arg16[%c0_3, %c8, %c0_4] : memref<2x24x128xf32, #tpu.memory_space<vmem>>, vector<2x16x128xf32>
    tpu.vector_store %arg16[%c0_3, %c8, %c0_4], %3 {strides = array<i32>} : memref<2x24x128xf32, #tpu.memory_space<vmem>>, vector<2x16x128xf32>,
    %c0_5 = arith.constant 0 : index
    %c7 = arith.constant 7 : index
    %c0_6 = arith.constant 0 : index
    %5 = vector.load %arg16[%c0_5, %c7, %c0_6] : memref<2x24x128xf32, #tpu.memory_space<vmem>>, vector<2x16x128xf32>
    %6 = vector.shape_cast %5 : vector<2x16x128xf32> to vector<32x128xf32>
    %7 = arith.truncf %6 : vector<32x128xf32> to vector<32x128xbf16>
    %c0_7 = arith.constant 0 : index
    %c0_8 = arith.constant 0 : index
    %8 = vector.load %arg2[%c0_7, %c0_8] : memref<256x256xbf16, #tpu.memory_space<vmem>>, vector<128x256xbf16>
    %cst = arith.constant dense<0.000000e+00> : vector<32x256xf32>
    %9 = tpu.matmul %7, %8, %cst {dimension_numbers = #tpu.dot_dimension_numbers<[1], [0], [0], [1], [0, 0, 1, 1], [], []>} : vector<32x128xbf16>, vector<128x256xbf16>, vector<32x256xf32> -> vector<32x256xf32>
    %c0_9 = arith.constant 0 : index
    %c8_10 = arith.constant 8 : index
    %c0_11 = arith.constant 0 : index
    %10 = vector.load %arg16[%c0_9, %c8_10, %c0_11] : memref<2x24x128xf32, #tpu.memory_space<vmem>>, vector<2x16x128xf32>
    %11 = vector.shape_cast %10 : vector<2x16x128xf32> to vector<32x128xf32>
    %12 = arith.truncf %11 : vector<32x128xf32> to vector<32x128xbf16>
    %c128 = arith.constant 128 : index
    %c0_12 = arith.constant 0 : index
    %13 = vector.load %arg2[%c128, %c0_12] : memref<256x256xbf16, #tpu.memory_space<vmem>>, vector<128x256xbf16>
    %cst_13 = arith.constant dense<0.000000e+00> : vector<32x256xf32>
    %14 = tpu.matmul %12, %13, %cst_13 {dimension_numbers = #tpu.dot_dimension_numbers<[1], [0], [0], [1], [0, 0, 1, 1], [], []>} : vector<32x128xbf16>, vector<128x256xbf16>, vector<32x256xf32> -> vector<32x256xf32>
    %15 = arith.addf %9, %14 : vector<32x256xf32>
    %c0_14 = arith.constant 0 : index
    %c0_15 = arith.constant 0 : index
    %16 = vector.load %arg3[%c0_14, %c0_15] : memref<1x256xf32, #tpu.memory_space<vmem>>, vector<1x256xf32>
    %17 = vector.broadcast %16 : vector<1x256xf32> to vector<32x256xf32>
    %18 = arith.addf %15, %17 : vector<32x256xf32>
    %19 = vector.extract_strided_slice %18 {offsets = [0, 0], sizes = [32, 128], strides = [1, 1]} : vector<32x256xf32> to vector<32x128xf32>
    %cst_16 = arith.constant 0.000000e+00 : f32
    %20 = vector.broadcast %cst_16 : f32 to vector<32x128xf32>
    %21 = arith.maximumf %19, %20 : vector<32x128xf32>
    %22 = vector.extract_strided_slice %18 {offsets = [0, 128], sizes = [32, 128], strides = [1, 1]} : vector<32x256xf32> to vector<32x128xf32>
    %23 = vector.shape_cast %21 : vector<32x128xf32> to vector<2x16x128xf32>
    %c0_17 = arith.constant 0 : index
    %c8_18 = arith.constant 8 : index
    %c0_19 = arith.constant 0 : index
    %24 = vector.load %arg17[%c0_17, %c8_18, %c0_19] : memref<2x24x128xf32, #tpu.memory_space<vmem>>, vector<2x16x128xf32>
    tpu.vector_store %arg17[%c0_17, %c8_18, %c0_19], %23 {strides = array<i32>} : memref<2x24x128xf32, #tpu.memory_space<vmem>>, vector<2x16x128xf32>,
    %c0_20 = arith.constant 0 : index
    %c7_21 = arith.constant 7 : index
    %c0_22 = arith.constant 0 : index
    %25 = vector.load %arg17[%c0_20, %c7_21, %c0_22] : memref<2x24x128xf32, #tpu.memory_space<vmem>>, vector<2x16x128xf32>
    %26 = vector.shape_cast %25 : vector<2x16x128xf32> to vector<32x128xf32>
    %27 = arith.truncf %26 : vector<32x128xf32> to vector<32x128xbf16>
    %c0_23 = arith.constant 0 : index
    %c0_24 = arith.constant 0 : index
    %28 = vector.load %arg4[%c0_23, %c0_24] : memref<256x128xbf16, #tpu.memory_space<vmem>>, vector<128x128xbf16>
    %cst_25 = arith.constant dense<0.000000e+00> : vector<32x128xf32>
    %29 = tpu.matmul %27, %28, %cst_25 {dimension_numbers = #tpu.dot_dimension_numbers<[1], [0], [0], [1], [0, 0, 1, 1], [], []>} : vector<32x128xbf16>, vector<128x128xbf16>, vector<32x128xf32> -> vector<32x128xf32>
    %c0_26 = arith.constant 0 : index
    %c8_27 = arith.constant 8 : index
    %c0_28 = arith.constant 0 : index
    %30 = vector.load %arg17[%c0_26, %c8_27, %c0_28] : memref<2x24x128xf32, #tpu.memory_space<vmem>>, vector<2x16x128xf32>
    %31 = vector.shape_cast %30 : vector<2x16x128xf32> to vector<32x128xf32>
    %32 = arith.truncf %31 : vector<32x128xf32> to vector<32x128xbf16>
    %c128_29 = arith.constant 128 : index
    %c0_30 = arith.constant 0 : index
    %33 = vector.load %arg4[%c128_29, %c0_30] : memref<256x128xbf16, #tpu.memory_space<vmem>>, vector<128x128xbf16>
    %cst_31 = arith.constant dense<0.000000e+00> : vector<32x128xf32>
    %34 = tpu.matmul %32, %33, %cst_31 {dimension_numbers = #tpu.dot_dimension_numbers<[1], [0], [0], [1], [0, 0, 1, 1], [], []>} : vector<32x128xbf16>, vector<128x128xbf16>, vector<32x128xf32> -> vector<32x128xf32>
    %35 = arith.addf %29, %34 : vector<32x128xf32>
    %c0_32 = arith.constant 0 : index
    %c0_33 = arith.constant 0 : index
    %36 = vector.load %arg5[%c0_32, %c0_33] : memref<1x128xf32, #tpu.memory_space<vmem>>, vector<1x128xf32>
    %37 = vector.broadcast %36 : vector<1x128xf32> to vector<32x128xf32>
    %38 = arith.addf %35, %37 : vector<32x128xf32>
    %cst_34 = arith.constant 0.000000e+00 : f32
    %39 = vector.broadcast %cst_34 : f32 to vector<32x128xf32>
    %40 = arith.maximumf %38, %39 : vector<32x128xf32>
    %41 = arith.addf %40, %22 : vector<32x128xf32>
    %cst_35 = arith.constant 0.000000e+00 : f32
    %42 = vector.broadcast %cst_35 : f32 to vector<32x128xf32>
    %43 = arith.maximumf %41, %42 : vector<32x128xf32>
    %44 = vector.shape_cast %43 : vector<32x128xf32> to vector<2x16x128xf32>
    %c0_36 = arith.constant 0 : index
    %c8_37 = arith.constant 8 : index
    %c0_38 = arith.constant 0 : index
    %45 = vector.load %arg18[%c0_36, %c8_37, %c0_38] : memref<2x24x128xf32, #tpu.memory_space<vmem>>, vector<2x16x128xf32>
    tpu.vector_store %arg18[%c0_36, %c8_37, %c0_38], %44 {strides = array<i32>} : memref<2x24x128xf32, #tpu.memory_space<vmem>>, vector<2x16x128xf32>,
    %c0_39 = arith.constant 0 : index
    %c6 = arith.constant 6 : index
    %c0_40 = arith.constant 0 : index
    %46 = vector.load %arg18[%c0_39, %c6, %c0_40] : memref<2x24x128xf32, #tpu.memory_space<vmem>>, vector<2x16x128xf32>
    %47 = vector.shape_cast %46 : vector<2x16x128xf32> to vector<32x128xf32>
    %48 = arith.truncf %47 : vector<32x128xf32> to vector<32x128xbf16>
    %c0_41 = arith.constant 0 : index
    %c0_42 = arith.constant 0 : index
    %49 = vector.load %arg6[%c0_41, %c0_42] : memref<256x128xbf16, #tpu.memory_space<vmem>>, vector<128x128xbf16>
    %cst_43 = arith.constant dense<0.000000e+00> : vector<32x128xf32>
    %50 = tpu.matmul %48, %49, %cst_43 {dimension_numbers = #tpu.dot_dimension_numbers<[1], [0], [0], [1], [0, 0, 1, 1], [], []>} : vector<32x128xbf16>, vector<128x128xbf16>, vector<32x128xf32> -> vector<32x128xf32>
    %c0_44 = arith.constant 0 : index
    %c8_45 = arith.constant 8 : index
    %c0_46 = arith.constant 0 : index
    %51 = vector.load %arg18[%c0_44, %c8_45, %c0_46] : memref<2x24x128xf32, #tpu.memory_space<vmem>>, vector<2x16x128xf32>
    %52 = vector.shape_cast %51 : vector<2x16x128xf32> to vector<32x128xf32>
    %53 = arith.truncf %52 : vector<32x128xf32> to vector<32x128xbf16>
    %c128_47 = arith.constant 128 : index
    %c0_48 = arith.constant 0 : index
    %54 = vector.load %arg6[%c128_47, %c0_48] : memref<256x128xbf16, #tpu.memory_space<vmem>>, vector<128x128xbf16>
    %cst_49 = arith.constant dense<0.000000e+00> : vector<32x128xf32>
    %55 = tpu.matmul %53, %54, %cst_49 {dimension_numbers = #tpu.dot_dimension_numbers<[1], [0], [0], [1], [0, 0, 1, 1], [], []>} : vector<32x128xbf16>, vector<128x128xbf16>, vector<32x128xf32> -> vector<32x128xf32>
    %56 = arith.addf %50, %55 : vector<32x128xf32>
    %c0_50 = arith.constant 0 : index
    %c0_51 = arith.constant 0 : index
    %57 = vector.load %arg7[%c0_50, %c0_51] : memref<1x128xf32, #tpu.memory_space<vmem>>, vector<1x128xf32>
    %58 = vector.broadcast %57 : vector<1x128xf32> to vector<32x128xf32>
    %59 = arith.addf %56, %58 : vector<32x128xf32>
    %cst_52 = arith.constant 0.000000e+00 : f32
    %60 = vector.broadcast %cst_52 : f32 to vector<32x128xf32>
    %61 = arith.maximumf %59, %60 : vector<32x128xf32>
    %62 = vector.shape_cast %44 : vector<2x16x128xf32> to vector<32x128xf32>
    %63 = vector.shape_cast %61 : vector<32x128xf32> to vector<2x16x128xf32>
    %c0_53 = arith.constant 0 : index
    %c8_54 = arith.constant 8 : index
    %c0_55 = arith.constant 0 : index
    %64 = vector.load %arg19[%c0_53, %c8_54, %c0_55] : memref<2x24x128xf32, #tpu.memory_space<vmem>>, vector<2x16x128xf32>
    tpu.vector_store %arg19[%c0_53, %c8_54, %c0_55], %63 {strides = array<i32>} : memref<2x24x128xf32, #tpu.memory_space<vmem>>, vector<2x16x128xf32>,
    %c0_56 = arith.constant 0 : index
    %c6_57 = arith.constant 6 : index
    %c0_58 = arith.constant 0 : index
    %65 = vector.load %arg19[%c0_56, %c6_57, %c0_58] : memref<2x24x128xf32, #tpu.memory_space<vmem>>, vector<2x16x128xf32>
    %66 = vector.shape_cast %65 : vector<2x16x128xf32> to vector<32x128xf32>
    %67 = arith.truncf %66 : vector<32x128xf32> to vector<32x128xbf16>
    %c0_59 = arith.constant 0 : index
    %c0_60 = arith.constant 0 : index
    %68 = vector.load %arg8[%c0_59, %c0_60] : memref<256x128xbf16, #tpu.memory_space<vmem>>, vector<128x128xbf16>
    %cst_61 = arith.constant dense<0.000000e+00> : vector<32x128xf32>
    %69 = tpu.matmul %67, %68, %cst_61 {dimension_numbers = #tpu.dot_dimension_numbers<[1], [0], [0], [1], [0, 0, 1, 1], [], []>} : vector<32x128xbf16>, vector<128x128xbf16>, vector<32x128xf32> -> vector<32x128xf32>
    %c0_62 = arith.constant 0 : index
    %c8_63 = arith.constant 8 : index
    %c0_64 = arith.constant 0 : index
    %70 = vector.load %arg19[%c0_62, %c8_63, %c0_64] : memref<2x24x128xf32, #tpu.memory_space<vmem>>, vector<2x16x128xf32>
    %71 = vector.shape_cast %70 : vector<2x16x128xf32> to vector<32x128xf32>
    %72 = arith.truncf %71 : vector<32x128xf32> to vector<32x128xbf16>
    %c128_65 = arith.constant 128 : index
    %c0_66 = arith.constant 0 : index
    %73 = vector.load %arg8[%c128_65, %c0_66] : memref<256x128xbf16, #tpu.memory_space<vmem>>, vector<128x128xbf16>
    %cst_67 = arith.constant dense<0.000000e+00> : vector<32x128xf32>
    %74 = tpu.matmul %72, %73, %cst_67 {dimension_numbers = #tpu.dot_dimension_numbers<[1], [0], [0], [1], [0, 0, 1, 1], [], []>} : vector<32x128xbf16>, vector<128x128xbf16>, vector<32x128xf32> -> vector<32x128xf32>
    %75 = arith.addf %69, %74 : vector<32x128xf32>
    %c0_68 = arith.constant 0 : index
    %c0_69 = arith.constant 0 : index
    %76 = vector.load %arg9[%c0_68, %c0_69] : memref<1x128xf32, #tpu.memory_space<vmem>>, vector<1x128xf32>
    %77 = vector.broadcast %76 : vector<1x128xf32> to vector<32x128xf32>
    %78 = arith.addf %75, %77 : vector<32x128xf32>
    %cst_70 = arith.constant 0.000000e+00 : f32
    %79 = vector.broadcast %cst_70 : f32 to vector<32x128xf32>
    %80 = arith.maximumf %78, %79 : vector<32x128xf32>
    %81 = arith.addf %80, %62 : vector<32x128xf32>
    %cst_71 = arith.constant 0.000000e+00 : f32
    %82 = vector.broadcast %cst_71 : f32 to vector<32x128xf32>
    %83 = arith.maximumf %81, %82 : vector<32x128xf32>
    %84 = vector.shape_cast %83 : vector<32x128xf32> to vector<2x16x128xf32>
    %85 = vector.shape_cast %84 : vector<2x16x128xf32> to vector<32x128xf32>
    %86 = arith.truncf %85 : vector<32x128xf32> to vector<32x128xbf16>
    %c0_72 = arith.constant 0 : index
    %c0_73 = arith.constant 0 : index
    %87 = vector.load %arg10[%c0_72, %c0_73] : memref<128x384xbf16, #tpu.memory_space<vmem>>, vector<128x384xbf16>
    %cst_74 = arith.constant dense<0.000000e+00> : vector<32x384xf32>
    %88 = tpu.matmul %86, %87, %cst_74 {dimension_numbers = #tpu.dot_dimension_numbers<[1], [0], [0], [1], [0, 0, 1, 1], [], []>} : vector<32x128xbf16>, vector<128x384xbf16>, vector<32x384xf32> -> vector<32x384xf32>
    %c0_75 = arith.constant 0 : index
    %c0_76 = arith.constant 0 : index
    %89 = vector.load %arg11[%c0_75, %c0_76] : memref<1x384xf32, #tpu.memory_space<vmem>>, vector<1x384xf32>
    %90 = vector.broadcast %89 : vector<1x384xf32> to vector<32x384xf32>
    %91 = arith.addf %88, %90 : vector<32x384xf32>
    %92 = vector.extract_strided_slice %91 {offsets = [0, 0], sizes = [32, 128], strides = [1, 1]} : vector<32x384xf32> to vector<32x128xf32>
    %93 = vector.shape_cast %92 : vector<32x128xf32> to vector<2x16x128xf32>
    %94 = arith.truncf %93 : vector<2x16x128xf32> to vector<2x16x128xbf16>
    %95 = vector.extract_strided_slice %91 {offsets = [0, 128], sizes = [32, 128], strides = [1, 1]} : vector<32x384xf32> to vector<32x128xf32>
    %96 = vector.shape_cast %95 : vector<32x128xf32> to vector<2x16x128xf32>
    %97 = arith.truncf %96 : vector<2x16x128xf32> to vector<2x16x128xbf16>
    %98 = vector.extract_strided_slice %91 {offsets = [0, 256], sizes = [32, 128], strides = [1, 1]} : vector<32x384xf32> to vector<32x128xf32>
    %99 = vector.shape_cast %98 : vector<32x128xf32> to vector<2x16x128xf32>
    %100 = arith.truncf %99 : vector<2x16x128xf32> to vector<2x16x128xbf16>
    "tpu.trace_start"() <{level = 10 : i32, message = "bqd,bkd->bqk"}> : () -> ()
    %cst_77 = arith.constant dense<0.000000e+00> : vector<2x16x16xf32>
    %101 = tpu.matmul %94, %97, %cst_77 {dimension_numbers = #tpu.dot_dimension_numbers<[2], [2], [1], [1], [0, 0, 0, 1, 1, 1], [0], [0]>} : vector<2x16x128xbf16>, vector<2x16x128xbf16>, vector<2x16x16xf32> -> vector<2x16x16xf32>
    "tpu.trace_stop"() : () -> ()
    %cst_78 = arith.constant dense<0xFF800000> : vector<2x16xf32>
    %102 = vector.multi_reduction <maximumf>, %101, %cst_78 [2] : vector<2x16x16xf32> to vector<2x16xf32>
    %103 = vector.shape_cast %102 : vector<2x16xf32> to vector<2x16x1xf32>
    %104 = vector.broadcast %103 : vector<2x16x1xf32> to vector<2x16x16xf32>
    %105 = arith.subf %101, %104 : vector<2x16x16xf32>
    %106 = math.exp %105 : vector<2x16x16xf32>
    %cst_79 = arith.constant dense<0.000000e+00> : vector<2x16xf32>
    %107 = vector.multi_reduction <add>, %106, %cst_79 [2] : vector<2x16x16xf32> to vector<2x16xf32>
    %108 = vector.shape_cast %107 : vector<2x16xf32> to vector<2x16x1xf32>
    %109 = tpu.reciprocal %108 {approx = true} : vector<2x16x1xf32> -> vector<2x16x1xf32>
    %110 = vector.broadcast %109 : vector<2x16x1xf32> to vector<2x16x16xf32>
    %111 = arith.mulf %106, %110 : vector<2x16x16xf32>
    %112 = arith.truncf %111 : vector<2x16x16xf32> to vector<2x16x16xbf16>
    "tpu.trace_start"() <{level = 10 : i32, message = "bqk,bkd->bqd"}> : () -> ()
    %cst_80 = arith.constant dense<0.000000e+00> : vector<2x16x128xf32>
    %113 = tpu.matmul %112, %100, %cst_80 {dimension_numbers = #tpu.dot_dimension_numbers<[2], [1], [1], [2], [0, 0, 0, 1, 1, 2], [0], [0]>} : vector<2x16x16xbf16>, vector<2x16x128xbf16>, vector<2x16x128xf32> -> vector<2x16x128xf32>
    "tpu.trace_stop"() : () -> ()
    %114 = arith.truncf %113 : vector<2x16x128xf32> to vector<2x16x128xbf16>
    %115 = vector.shape_cast %114 : vector<2x16x128xbf16> to vector<32x128xbf16>
    %c0_81 = arith.constant 0 : index
    %c0_82 = arith.constant 0 : index
    %116 = vector.load %arg12[%c0_81, %c0_82] : memref<128x384xbf16, #tpu.memory_space<vmem>>, vector<128x384xbf16>
    %cst_83 = arith.constant dense<0.000000e+00> : vector<32x384xf32>
    %117 = tpu.matmul %115, %116, %cst_83 {dimension_numbers = #tpu.dot_dimension_numbers<[1], [0], [0], [1], [0, 0, 1, 1], [], []>} : vector<32x128xbf16>, vector<128x384xbf16>, vector<32x384xf32> -> vector<32x384xf32>
    %c0_84 = arith.constant 0 : index
    %c0_85 = arith.constant 0 : index
    %118 = vector.load %arg13[%c0_84, %c0_85] : memref<1x384xf32, #tpu.memory_space<vmem>>, vector<1x384xf32>
    %119 = vector.broadcast %118 : vector<1x384xf32> to vector<32x384xf32>
    %120 = arith.addf %117, %119 : vector<32x384xf32>
    %121 = vector.extract_strided_slice %120 {offsets = [0, 0], sizes = [32, 128], strides = [1, 1]} : vector<32x384xf32> to vector<32x128xf32>
    %122 = vector.shape_cast %121 : vector<32x128xf32> to vector<2x16x128xf32>
    %123 = vector.extract_strided_slice %122 {offsets = [0, 15, 0], sizes = [2, 1, 128], strides = [1, 1, 1]} : vector<2x16x128xf32> to vector<2x1x128xf32>
    %124 = arith.truncf %123 : vector<2x1x128xf32> to vector<2x1x128xbf16>
    %125 = vector.extract_strided_slice %120 {offsets = [0, 128], sizes = [32, 128], strides = [1, 1]} : vector<32x384xf32> to vector<32x128xf32>
    %126 = vector.shape_cast %125 : vector<32x128xf32> to vector<2x16x128xf32>
    %127 = arith.truncf %126 : vector<2x16x128xf32> to vector<2x16x128xbf16>
    %128 = vector.extract_strided_slice %120 {offsets = [0, 256], sizes = [32, 128], strides = [1, 1]} : vector<32x384xf32> to vector<32x128xf32>
    %129 = vector.shape_cast %128 : vector<32x128xf32> to vector<2x16x128xf32>
    %130 = arith.truncf %129 : vector<2x16x128xf32> to vector<2x16x128xbf16>
    "tpu.trace_start"() <{level = 10 : i32, message = "bqd,bkd->bqk"}> : () -> ()
    %cst_86 = arith.constant dense<0.000000e+00> : vector<2x1x16xf32>
    %131 = tpu.matmul %124, %127, %cst_86 {dimension_numbers = #tpu.dot_dimension_numbers<[2], [2], [1], [1], [0, 0, 0, 1, 1, 1], [0], [0]>} : vector<2x1x128xbf16>, vector<2x16x128xbf16>, vector<2x1x16xf32> -> vector<2x1x16xf32>
    "tpu.trace_stop"() : () -> ()
    %cst_87 = arith.constant dense<0xFF800000> : vector<2x1xf32>
    %132 = vector.multi_reduction <maximumf>, %131, %cst_87 [2] : vector<2x1x16xf32> to vector<2x1xf32>
    %133 = vector.shape_cast %132 : vector<2x1xf32> to vector<2x1x1xf32>
    %134 = vector.broadcast %133 : vector<2x1x1xf32> to vector<2x1x16xf32>
    %135 = arith.subf %131, %134 : vector<2x1x16xf32>
    %136 = math.exp %135 : vector<2x1x16xf32>
    %cst_88 = arith.constant dense<0.000000e+00> : vector<2x1xf32>
    %137 = vector.multi_reduction <add>, %136, %cst_88 [2] : vector<2x1x16xf32> to vector<2x1xf32>
    %138 = vector.shape_cast %137 : vector<2x1xf32> to vector<2x1x1xf32>
    %139 = tpu.reciprocal %138 {approx = true} : vector<2x1x1xf32> -> vector<2x1x1xf32>
    %140 = vector.broadcast %139 : vector<2x1x1xf32> to vector<2x1x16xf32>
    %141 = arith.mulf %136, %140 : vector<2x1x16xf32>
    %142 = arith.truncf %141 : vector<2x1x16xf32> to vector<2x1x16xbf16>
    "tpu.trace_start"() <{level = 10 : i32, message = "bqk,bko->bqo"}> : () -> ()
    %cst_89 = arith.constant dense<0.000000e+00> : vector<2x1x128xf32>
    %143 = tpu.matmul %142, %130, %cst_89 {dimension_numbers = #tpu.dot_dimension_numbers<[2], [1], [1], [2], [0, 0, 0, 1, 1, 2], [0], [0]>} : vector<2x1x16xbf16>, vector<2x16x128xbf16>, vector<2x1x128xf32> -> vector<2x1x128xf32>
    "tpu.trace_stop"() : () -> ()
    %c0_90 = arith.constant 0 : index
    %c0_91 = arith.constant 0 : index
    %144 = vector.load %arg14[%c0_90, %c0_91] : memref<1x128xf32, #tpu.memory_space<vmem>>, vector<1x128xf32>
    %145 = vector.shape_cast %144 : vector<1x128xf32> to vector<1x1x128xf32>
    %146 = vector.broadcast %145 : vector<1x1x128xf32> to vector<2x1x128xf32>
    %147 = arith.addf %143, %146 : vector<2x1x128xf32>
    %c0_92 = arith.constant 0 : index
    %c0_93 = arith.constant 0 : index
    %c0_94 = arith.constant 0 : index
    %148 = vector.load %arg15[%c0_92, %c0_93, %c0_94] : memref<2x1x128xf32, #tpu.memory_space<vmem>>, vector<2x1x128xf32>
    tpu.vector_store %arg15[%c0_92, %c0_93, %c0_94], %147 {strides = array<i32>} : memref<2x1x128xf32, #tpu.memory_space<vmem>>, vector<2x1x128xf32>,
    return
  }
  func.func @transform_0(%arg0: i32) -> (i32, i32, i32) {
    %c0_i32 = arith.constant 0 : i32
    %c0_i32_0 = arith.constant 0 : i32
    %c0_i32_1 = arith.constant 0 : i32
    return %arg0, %c0_i32, %c0_i32_0 : i32, i32, i32
  }
  func.func @transform_1(%arg0: i32) -> (i32, i32) {
    %c0_i32 = arith.constant 0 : i32
    %c0_i32_0 = arith.constant 0 : i32
    %c0_i32_1 = arith.constant 0 : i32
    return %c0_i32, %c0_i32_0 : i32, i32
  }
  func.func @transform_2(%arg0: i32) -> (i32, i32) {
    %c0_i32 = arith.constant 0 : i32
    %c0_i32_0 = arith.constant 0 : i32
    %c0_i32_1 = arith.constant 0 : i32
    return %c0_i32, %c0_i32_0 : i32, i32
  }
  func.func @transform_3(%arg0: i32) -> (i32, i32) {
    %c0_i32 = arith.constant 0 : i32
    %c0_i32_0 = arith.constant 0 : i32
    %c0_i32_1 = arith.constant 0 : i32
    return %c0_i32, %c0_i32_0 : i32, i32
  }
  func.func @transform_4(%arg0: i32) -> (i32, i32) {
    %c0_i32 = arith.constant 0 : i32
    %c0_i32_0 = arith.constant 0 : i32
    %c0_i32_1 = arith.constant 0 : i32
    return %c0_i32, %c0_i32_0 : i32, i32
  }
  func.func @transform_5(%arg0: i32) -> (i32, i32) {
    %c0_i32 = arith.constant 0 : i32
    %c0_i32_0 = arith.constant 0 : i32
    %c0_i32_1 = arith.constant 0 : i32
    return %c0_i32, %c0_i32_0 : i32, i32
  }
  func.func @transform_6(%arg0: i32) -> (i32, i32) {
    %c0_i32 = arith.constant 0 : i32
    %c0_i32_0 = arith.constant 0 : i32
    %c0_i32_1 = arith.constant 0 : i32
    return %c0_i32, %c0_i32_0 : i32, i32
  }
  func.func @transform_7(%arg0: i32) -> (i32, i32) {
    %c0_i32 = arith.constant 0 : i32
    %c0_i32_0 = arith.constant 0 : i32
    %c0_i32_1 = arith.constant 0 : i32
    return %c0_i32, %c0_i32_0 : i32, i32
  }
  func.func @transform_8(%arg0: i32) -> (i32, i32) {
    %c0_i32 = arith.constant 0 : i32
    %c0_i32_0 = arith.constant 0 : i32
    %c0_i32_1 = arith.constant 0 : i32
    return %c0_i32, %c0_i32_0 : i32, i32
  }
  func.func @transform_9(%arg0: i32) -> (i32, i32) {
    %c0_i32 = arith.constant 0 : i32
    %c0_i32_0 = arith.constant 0 : i32
    %c0_i32_1 = arith.constant 0 : i32
    return %c0_i32, %c0_i32_0 : i32, i32
  }
  func.func @transform_10(%arg0: i32) -> (i32, i32) {
    %c0_i32 = arith.constant 0 : i32
    %c0_i32_0 = arith.constant 0 : i32
    %c0_i32_1 = arith.constant 0 : i32
    return %c0_i32, %c0_i32_0 : i32, i32
  }
  func.func @transform_11(%arg0: i32) -> (i32, i32) {
    %c0_i32 = arith.constant 0 : i32
    %c0_i32_0 = arith.constant 0 : i32
    %c0_i32_1 = arith.constant 0 : i32
    return %c0_i32, %c0_i32_0 : i32, i32
  }
  func.func @transform_12(%arg0: i32) -> (i32, i32) {
    %c0_i32 = arith.constant 0 : i32
    %c0_i32_0 = arith.constant 0 : i32
    %c0_i32_1 = arith.constant 0 : i32
    return %c0_i32, %c0_i32_0 : i32, i32
  }
  func.func @transform_13(%arg0: i32) -> (i32, i32) {
    %c0_i32 = arith.constant 0 : i32
    %c0_i32_0 = arith.constant 0 : i32
    %c0_i32_1 = arith.constant 0 : i32
    return %c0_i32, %c0_i32_0 : i32, i32
  }
  func.func @transform_14(%arg0: i32) -> (i32, i32, i32) {
    %c0_i32 = arith.constant 0 : i32
    %c0_i32_0 = arith.constant 0 : i32
    %c0_i32_1 = arith.constant 0 : i32
    return %arg0, %c0_i32, %c0_i32_0 : i32, i32, i32
  }
}

</mosaic_0001>

<bundles_post_ra>
// kernel: tpu_custom_call.1
= control target key start
LH: loop header
LB: loop body
LE: loop exit
PB: predicated region body
PF: predicated region fallthrough
CT: control target
= control target key end

     0   :  { %19 = vsyncpa [#allocation7], 0  ;;  %s3406_s0 = inlined_call_operand.hbm [shape: f32[2,16,128], index: 0, kind: input, shape index: {}]   ;;  %s3407_s1 = inlined_call_operand.hbm [shape: bf16[256,256], index: 1, kind: input, shape index: {}]   ;;  %s3408_s2 = inlined_call_operand.hbm [shape: f32[1,256], index: 2, kind: input, shape index: {}]   ;;  %s3409_s3 = inlined_call_operand.hbm [shape: bf16[256,128], index: 3, kind: input, shape index: {}]   ;;  %s3410_s4 = inlined_call_operand.vmem [shape: f32[1,128], index: 4, kind: input, shape index: {}]   ;;  %s3411_s5 = inlined_call_operand.hbm [shape: bf16[256,128], index: 5, kind: input, shape index: {}]   ;;  %s3412_s6 = inlined_call_operand.vmem [shape: f32[1,128], index: 6, kind: input, shape index: {}]   ;;  %s3413_s7 = inlined_call_operand.hbm [shape: bf16[256,128], index: 7, kind: input, shape index: {}]   ;;  %s3414_s8 = inlined_call_operand.vmem [shape: f32[1,128], index: 8, kind: input, shape index: {}]   ;;  %s3415_s9 = inlined_call_operand.hbm [shape: bf16[128,384], index: 9, kind: input, shape index: {}]   ;;  %s3416_s10 = inlined_call_operand.vmem [shape: f32[1,384], index: 10, kind: input, shape index: {}]   ;;  %s3417_s11 = inlined_call_operand.hbm [shape: bf16[128,384], index: 11, kind: input, shape index: {}]   ;;  %s3418_s12 = inlined_call_operand.vmem [shape: f32[1,384], index: 12, kind: input, shape index: {}]   ;;  %s3419_s13 = inlined_call_operand.vmem [shape: f32[1,128], index: 13, kind: input, shape index: {}]   ;;  %s3420_s14 = inlined_call_operand.hbm [shape: f32[2,1,128], index: 14, kind: output, shape index: {}]  }
   0x1   :  { %20 = vsyncpa [#allocation10], 0 }
   0x2   :  { %21 = vsyncpa [#allocation13], 0 }
   0x3   :  { %22 = vsyncpa [#allocation16], 0 }
   0x4   :  { %23 = vsyncpa [#allocation19], 0 }
   0x5   :  { %24 = vsyncpa [#allocation8], 0  ;;  %s3147_s29 = smov [#allocation9]   ;;  %s3148_s15 = smov [#allocation12]  }
   0x6   :  { %s42_s30 = sshll.u32 %s3147_s29, 4  ;;  %s64_s16 = sshll.u32 %s3148_s15, 4  ;;  %s43_s30 = int_to_ptr.vmem [resolvable:$true] %s42_s30  ;;  %s65_s16 = int_to_ptr.vmem [resolvable:$true] %s64_s16 }
   0x7   :  { %s2963_s17 = scalar_lea.vmem %s43_s30, 4096  ;;  %p2968_p1 = scmp.lt.s32.totalorder %s43_s30, %s43_s30 }
   0x8   :  { %p2964_p0 = scmp.ne.s32.totalorder %s43_s30, %s2963_s17  ;;  %p2969_p2 = scmp.lt.s32.totalorder %s2963_s17, %s2963_s17 }
   0xa   :  { %p2970_p3 = por %p2969_p2, %p2968_p1 }
   0xc   :  { %p2971_p4 = pnand %p2970_p3, %p2964_p0 }
   0xe   :  { %2974 = shalt.err (!%p2971_p4)
}
   0xf   :  { %s3149_s18 = smov 128   ;;  %s3150_s19 = smov 8  }
  0x10   :  { %48 = dma.hbm_to_vmem [thread:$0]  %s3407_s1, 4096, %s43_s30, [#allocation10], %s3149_s18, %s3149_s18, %s3150_s19  }
  0x11   :  { %s2983_s22 = scalar_lea.vmem %s65_s16, 2048  ;;  %p2988_p6 = scmp.lt.s32.totalorder %s65_s16, %s65_s16 }
  0x12   :  { %p2984_p5 = scmp.ne.s32.totalorder %s65_s16, %s2983_s22  ;;  %p2989_p7 = scmp.lt.s32.totalorder %s2983_s22, %s2983_s22 }
  0x14   :  { %p2990_p8 = por %p2989_p7, %p2988_p6 }
  0x16   :  { %p2991_p9 = pnand %p2990_p8, %p2984_p5 }
  0x18   :  { %2994 = shalt.err (!%p2991_p9)
}
  0x19   :  { %s3151_s23 = smov 64   ;;  %s3152_s24 = smov 4  }
  0x1a   :  { %70 = dma.hbm_to_vmem [thread:$0]  %s3409_s3, 2048, %s65_s16, [#allocation13], %s3151_s23, %s3151_s23, %s3152_s24  }
  0x1b   :  { %s3153_s27 = smov [#allocation15]   ;;  %s3154_s29 = smov [#allocation6]  }
  0x1c   :  { %s92_s28 = sshll.u32 %s3153_s27, 4  ;;  %s30_s1 = sshll.u32 %s3154_s29, 4  ;;  %s93_s28 = int_to_ptr.vmem [resolvable:$true] %s92_s28  ;;  %s31_s1 = int_to_ptr.vmem [resolvable:$true] %s30_s1 }
  0x1d   :  { %s3003_s30 = scalar_lea.vmem %s93_s28, 2048  ;;  %p3008_p11 = scmp.lt.s32.totalorder %s93_s28, %s93_s28 }
  0x1e   :  { %p3004_p10 = scmp.ne.s32.totalorder %s93_s28, %s3003_s30  ;;  %p3009_p12 = scmp.lt.s32.totalorder %s3003_s30, %s3003_s30 }
  0x20   :  { %p3010_p13 = por %p3009_p12, %p3008_p11 }
  0x22   :  { %p3011_p0 = pnand %p3010_p13, %p3004_p10 }
  0x24   :  { %3014 = shalt.err (!%p3011_p0)
}
  0x25   :  { %98 = dma.hbm_to_vmem [thread:$0]  %s3413_s7, 2048, %s93_s28, [#allocation16], %s3151_s23, %s3151_s23, %s3152_s24  }
  0x26   :  { %s3023_s3 = scalar_lea.vmem %s31_s1, 512  ;;  %p3028_p2 = scmp.lt.s32.totalorder %s31_s1, %s31_s1 }
  0x27   :  { %p3024_p1 = scmp.ne.s32.totalorder %s31_s1, %s3023_s3  ;;  %p3029_p3 = scmp.lt.s32.totalorder %s3023_s3, %s3023_s3 }
  0x29   :  { %p3030_p4 = por %p3029_p3, %p3028_p2 }
  0x2b   :  { %p3031_p5 = pnand %p3030_p4, %p3024_p1 }
  0x2d   :  { %3034 = shalt.err (!%p3031_p5)
}
  0x2e   :  { %36 = dma.hbm_to_vmem [thread:$0]  %s3406_s0, 512, %s31_s1, [#allocation7], %s3149_s18, %s3149_s18, %s3150_s19  }
  0x2f   :  { %s3155_s21 = smov [#allocation11]   ;;  %s3156_s25 = smov [#allocation14]  }
  0x30   :  { %s55_s22 = sshll.u32 %s3155_s21, 4  ;;  %s78_s26 = sshll.u32 %s3156_s25, 4  ;;  %s56_s22 = int_to_ptr.vmem [resolvable:$true] %s55_s22  ;;  %s79_s26 = int_to_ptr.vmem [resolvable:$true] %s78_s26 }
  0x31   :  { %s3043_s7 = scalar_lea.vmem %s56_s22, 32  ;;  %p3048_p7 = scmp.lt.s32.totalorder %s56_s22, %s56_s22 }
  0x32   :  { %p3044_p6 = scmp.ne.s32.totalorder %s56_s22, %s3043_s7  ;;  %p3049_p8 = scmp.lt.s32.totalorder %s3043_s7, %s3043_s7 }
  0x34   :  { %p3050_p9 = por %p3049_p8, %p3048_p7 }
  0x36   :  { %p3051_p10 = pnand %p3050_p9, %p3044_p6 }
  0x38   :  { %3054 = shalt.err (!%p3051_p10)
}
  0x39   :  { %58 = dma.hbm_to_vmem [thread:$0]  %s3408_s2, 32, %s56_s22, [#allocation10]  }
  0x3a   :  { %s3063_s29 = scalar_lea.vmem %s79_s26, 2048  ;;  %p3068_p12 = scmp.lt.s32.totalorder %s79_s26, %s79_s26 }
  0x3b   :  { %p3064_p11 = scmp.ne.s32.totalorder %s79_s26, %s3063_s29  ;;  %p3069_p13 = scmp.lt.s32.totalorder %s3063_s29, %s3063_s29 }
  0x3d   :  { %p3070_p0 = por %p3069_p13, %p3068_p12 }
  0x3f   :  { %p3071_p1 = pnand %p3070_p0, %p3064_p11 }
  0x41   :  { %3074 = shalt.err (!%p3071_p1)
}
  0x42   :  { %84 = dma.hbm_to_vmem [thread:$0]  %s3411_s5, 2048, %s79_s26, [#allocation13], %s3151_s23, %s3151_s23, %s3152_s24  }
  0x43   :  { %s3157_s19 = smov [#allocation17]  }
  0x44   :  { %s106_s1 = sshll.u32 %s3157_s19, 4  ;;  %s107_s1 = int_to_ptr.vmem [resolvable:$true] %s106_s1 }
  0x45   :  { %s3083_s30 = scalar_lea.vmem %s107_s1, 3072  ;;  %p3088_p3 = scmp.lt.s32.totalorder %s107_s1, %s107_s1 }
  0x46   :  { %p3084_p2 = scmp.ne.s32.totalorder %s107_s1, %s3083_s30  ;;  %p3089_p4 = scmp.lt.s32.totalorder %s3083_s30, %s3083_s30 }
  0x48   :  { %p3090_p5 = por %p3089_p4, %p3088_p3 }
  0x4a   :  { %p3091_p6 = pnand %p3090_p5, %p3084_p2 }
  0x4c   :  { %3094 = shalt.err (!%p3091_p6)
}
  0x4d   :  { %s3158_s2 = smov 192   ;;  %s3159_s15 = smov 12  }
  0x4e   :  { %112 = dma.hbm_to_vmem [thread:$0]  %s3415_s9, 3072, %s107_s1, [#allocation16], %s3158_s2, %s3158_s2, %s3159_s15  }
  0x4f   :  { %s3160_s16 = smov [#allocation18]  }
  0x50   :  { %s120_s20 = sshll.u32 %s3160_s16, 4  ;;  %s121_s20 = int_to_ptr.vmem [resolvable:$true] %s120_s20 }
  0x51   :  { %s3103_s5 = scalar_lea.vmem %s121_s20, 3072  ;;  %p3108_p8 = scmp.lt.s32.totalorder %s121_s20, %s121_s20 }
  0x52   :  { %p3104_p7 = scmp.ne.s32.totalorder %s121_s20, %s3103_s5  ;;  %p3109_p9 = scmp.lt.s32.totalorder %s3103_s5, %s3103_s5 }
  0x54   :  { %p3110_p10 = por %p3109_p9, %p3108_p8 }
  0x56   :  { %p3111_p11 = pnand %p3110_p10, %p3104_p7 }
  0x58   :  { %3114 = shalt.err (!%p3111_p11)
}
  0x59   :  { %126 = dma.hbm_to_vmem [thread:$0]  %s3417_s11, 3072, %s121_s20, [#allocation19], %s3158_s2, %s3158_s2, %s3159_s15  }
  0x5a   :  { %3135 = dma.done.wait [#allocation7], 512  }
  0x5b   :  { %3136 = vsyncadd [#allocation7], 4294966784 }
  0x5c   :  { %3137 = dma.done.wait [#allocation10], 4128  }
  0x5d   :  { %3138 = vsyncadd [#allocation10], 4294963168 }
  0x5e   :  { %3139 = dma.done.wait [#allocation13], 4096  }
  0x5f   :  { %3140 = vsyncadd [#allocation13], 4294963200 }
  0x60   :  { %3141 = dma.done.wait [#allocation16], 5120  }
  0x61   :  { %3142 = vsyncadd [#allocation16], 4294962176 }
  0x62   :  { %3143 = dma.done.wait [#allocation19], 3072  }
  0x63   :  { %3144 = vsyncadd [#allocation19], 4294964224  ;;  %v3161_v0 = vmov 0   ;;  %v3162_v1 = vmov 0.0   ;;  %v2770_v2 = vld [vmem:[#allocation9 + $0xf4] ss:$8 sps:$4 sm:$0xff]  }
  0x64   :  { %332 = vmatprep.mubr.bf16.mxu0 %v3161_v0  ;;  %465 = vmatprep.mubr.bf16.mxu1 %v3161_v0  ;;  %160 = vst [vmem:[#allocation2] sm:$0xff] %v3162_v1  ;;  %161 = vst [vmem:[#allocation2 + $0x18] sm:$0xff] %v3162_v1  ;;  %v2772_v3 = vld [vmem:[#allocation9 + $0x74] ss:$8 sps:$4 sm:$0xff]   ;;  %v2774_v4 = vld [vmem:[#allocation9 + $0xf0] ss:$8 sps:$4 sm:$0xff]  }
  0x65   :  { %162 = vst [vmem:[#allocation3] sm:$0xff] %v3162_v1  ;;  %163 = vst [vmem:[#allocation3 + $0x18] sm:$0xff] %v3162_v1  ;;  %300 = vmatprep.subr.bf16.mxu0 %v2770_v2  ;;  %v2775_v5 = vld [vmem:[#allocation9 + $0x70] ss:$8 sps:$4 sm:$0xff]   ;;  %433 = vmatprep.subr.bf16.mxu1 %v2772_v3  ;;  %v2776_v6 = vld [vmem:[#allocation9 + $0xe4] ss:$8 sps:$4 sm:$0xff]  }
  0x66   :  { %164 = vst [vmem:[#allocation4] sm:$0xff] %v3162_v1  ;;  %165 = vst [vmem:[#allocation4 + $0x18] sm:$0xff] %v3162_v1  ;;  %301 = vmatpush1.bf16.msra.mxu0 %v2774_v4  ;;  %434 = vmatpush1.bf16.msra.mxu1 %v2775_v5  ;;  %v2778_v7 = vld [vmem:[#allocation9 + $0x64] ss:$8 sps:$4 sm:$0xff]   ;;  %v2780_v8 = vld [vmem:[#allocation9 + $0xe0] ss:$8 sps:$4 sm:$0xff]  }
  0x67   :  { %166 = vst [vmem:[#allocation5] sm:$0xff] %v3162_v1  ;;  %167 = vst [vmem:[#allocation5 + $0x18] sm:$0xff] %v3162_v1  ;;  %302 = vmatprep.subr.bf16.mxu0 %v2776_v6  ;;  %v2781_v9 = vld [vmem:[#allocation9 + $0x60] ss:$8 sps:$4 sm:$0xff]   ;;  %435 = vmatprep.subr.bf16.mxu1 %v2778_v7  ;;  %v2782_v10 = vld [vmem:[#allocation9 + $0xd4] ss:$8 sps:$4 sm:$0xff]   ;;  %v488_v1 = vlaneseq }
  0x68   :  { %v2784_v11 = vld [vmem:[#allocation9 + $0x54] ss:$8 sps:$4 sm:$0xff]   ;;  %v2786_v12 = vld [vmem:[#allocation9 + $0xd0] ss:$8 sps:$4 sm:$0xff]   ;;  %v2788_v14 = vld [vmem:[#allocation9 + $0xc4] ss:$8 sps:$4 sm:$0xff]  }
  0x69   :  { %v2787_v13 = vld [vmem:[#allocation9 + $0x50] ss:$8 sps:$4 sm:$0xff]   ;;  %v2790_v15 = vld [vmem:[#allocation9 + $0x44] ss:$8 sps:$4 sm:$0xff]   ;;  %v2792_v16 = vld [vmem:[#allocation9 + $0xc0] ss:$8 sps:$4 sm:$0xff]  }
  0x6a   :  { %303 = vmatpush1.bf16.msra.mxu0 %v2780_v8  ;;  %436 = vmatpush1.bf16.msra.mxu1 %v2781_v9  ;;  %v2793_v17 = vld [vmem:[#allocation9 + $0x40] ss:$8 sps:$4 sm:$0xff]   ;;  %v2794_v18 = vld [vmem:[#allocation9 + $0xb4] ss:$8 sps:$4 sm:$0xff]   ;;  %v2798_v20 = vld [vmem:[#allocation9 + $0xb0] ss:$8 sps:$4 sm:$0xff]  }
  0x6b   :  { %304 = vmatprep.subr.bf16.mxu0 %v2782_v10  ;;  %437 = vmatprep.subr.bf16.mxu1 %v2784_v11  ;;  %v2796_v19 = vld [vmem:[#allocation9 + $0x34] ss:$8 sps:$4 sm:$0xff]   ;;  %v2799_v21 = vld [vmem:[#allocation9 + $0x30] ss:$8 sps:$4 sm:$0xff]   ;;  %v2800_v22 = vld [vmem:[#allocation9 + $0xa4] ss:$8 sps:$4 sm:$0xff]  }
  0x6c   :  { %v2802_v23 = vld [vmem:[#allocation9 + $0x24] ss:$8 sps:$4 sm:$0xff]   ;;  %v2804_v24 = vld [vmem:[#allocation9 + $0xa0] ss:$8 sps:$4 sm:$0xff]   ;;  %v2806_v26 = vld [vmem:[#allocation9 + $0x94] ss:$8 sps:$4 sm:$0xff]  }
  0x6d   :  { %v2805_v25 = vld [vmem:[#allocation9 + $0x20] ss:$8 sps:$4 sm:$0xff]   ;;  %v2808_v27 = vld [vmem:[#allocation9 + $0x14] ss:$8 sps:$4 sm:$0xff]   ;;  %v2810_v30 = vld [vmem:[#allocation9 + $0x90] ss:$8 sps:$4 sm:$0xff]  }
  0x6e   :  { %305 = vmatpush1.bf16.msra.mxu0 %v2786_v12  ;;  %438 = vmatpush1.bf16.msra.mxu1 %v2787_v13  ;;  %v168_v28 = vld [vmem:[#allocation6] sm:$0xff]  ;;  %v169_v29 = vld [vmem:[#allocation6 + $0x8] sm:$0xff]  ;;  %v2811_v31 = vld [vmem:[#allocation9 + $0x10] ss:$8 sps:$4 sm:$0xff]   ;;  %v3285_v2 = vshrl.u32 %v488_v1, 7  ;;  %vm3163_vm0 = vmmov 0  }
  0x6f   :  { %306 = vmatprep.subr.bf16.mxu0 %v2788_v14  ;;  %439 = vmatprep.subr.bf16.mxu1 %v2790_v15  ;;  %172 = vst [vmem:[#allocation2 + $0x8] sm:$0xff] %v168_v28  ;;  %173 = vst [vmem:[#allocation2 + $0x10] sm:$0xff] %v169_v29  ;;  %v170_v32 = vld [vmem:[#allocation6 + $0x10] sm:$0xff]  ;;  %v171_v33 = vld [vmem:[#allocation6 + $0x18] sm:$0xff]  ;;  %v202_v42 = vpack.c.bf16 %v169_v29, %v168_v28  ;;  %vm1666_vm1 = vcmask 130048   ;;  %vm2176_vm2 = vcmask 122880  }
  0x70   :  { %v2812_v34 = vld [vmem:[#allocation9 + $0x84] ss:$8 sps:$4 sm:$0xff]   ;;  %174 = vst [vmem:[#allocation2 + $0x20] sm:$0xff] %v170_v32  ;;  %175 = vst [vmem:[#allocation2 + $0x28] sm:$0xff] %v171_v33  ;;  %v2816_v36 = vld [vmem:[#allocation9 + $0x80] ss:$8 sps:$4 sm:$0xff]   ;;  %v203_v46 = vpack.c.bf16 %v171_v33, %v170_v32 }
  0x71   :  { %v2814_v35 = vld [vmem:[#allocation9 + $0x4] ss:$8 sps:$4 sm:$0xff]   ;;  %v2817_v37 = vld [vmem:[#allocation9] ss:$8 sps:$4 sm:$0xff]   ;;  %v2820_v48 = vld [vmem:[#allocation12 + $0x70] sm:$0xff]   ;;  %v3288_v3 = vsub.s32 0, %v3285_v2 }
  0x72   :  { %307 = vmatpush1.bf16.msra.mxu0 %v2792_v16  ;;  %440 = vmatpush1.bf16.msra.mxu1 %v2793_v17  ;;  %v2818_v38 = vld [vmem:[#allocation12 + $0x78] sm:$0xff]   ;;  %v2822_v49 = vld [vmem:[#allocation12 + $0x68] sm:$0xff]   ;;  %v2821_v50 = vld [vmem:[#allocation12 + $0x30] sm:$0xff]   ;;  %v3291_v5 = vsub.s32 1, %v3285_v2  ;;  %s3164_s27 = smov [#allocation20]  }
  0x73   :  { %308 = vmatprep.subr.bf16.mxu0 %v2794_v18  ;;  %441 = vmatprep.subr.bf16.mxu1 %v2796_v19  ;;  %v2819_v39 = vld [vmem:[#allocation12 + $0x38] sm:$0xff]   ;;  %v2824_v51 = vld [vmem:[#allocation12 + $0x60] sm:$0xff]   ;;  %v2823_v52 = vld [vmem:[#allocation12 + $0x28] sm:$0xff]   ;;  %s2295_s28 = sshll.u32 %s3164_s27, 4  ;;  %s2296_s28 = int_to_ptr.vmem [resolvable:$true] %s2295_s28 }
  0x74   :  { %v2826_v53 = vld [vmem:[#allocation12 + $0x58] sm:$0xff]   ;;  %v2825_v54 = vld [vmem:[#allocation12 + $0x20] sm:$0xff]   ;;  %v2828_v55 = vld [vmem:[#allocation12 + $0x50] sm:$0xff]   ;;  %s3115_s29 = scalar_lea.vmem %s2296_s28, 32  ;;  %p3120_p13 = scmp.lt.s32.totalorder %s2296_s28, %s2296_s28 }
  0x75   :  { %v2827_v56 = vld [vmem:[#allocation12 + $0x18] sm:$0xff]   ;;  %v2830_v57 = vld [vmem:[#allocation12 + $0x48] sm:$0xff]   ;;  %v2829_v58 = vld [vmem:[#allocation12 + $0x10] sm:$0xff]   ;;  %p3116_p12 = scmp.ne.s32.totalorder %s2296_s28, %s3115_s29  ;;  %p3121_p0 = scmp.lt.s32.totalorder %s3115_s29, %s3115_s29 }
  0x76   :  { %309 = vmatpush1.bf16.msra.mxu0 %v2798_v20  ;;  %442 = vmatpush1.bf16.msra.mxu1 %v2799_v21  ;;  %v176_v40 = vld [vmem:[#allocation2 + $0x7] sm:$0xff]  ;;  %v177_v41 = vld [vmem:[#allocation2 + $0xf] sm:$0xff]  ;;  %v2834_v62 = vld [vmem:[#allocation14 + $0x78] sm:$0xff]  }
  0x77   :  { %310 = vmatprep.subr.bf16.mxu0 %v2800_v22  ;;  %443 = vmatprep.subr.bf16.mxu1 %v2802_v23  ;;  %v180_v43 = vpack.c.bf16 %v177_v41, %v176_v40  ;;  %v178_v44 = vld [vmem:[#allocation2 + $0x1f] sm:$0xff]  ;;  %v179_v45 = vld [vmem:[#allocation2 + $0x27] sm:$0xff]  ;;  %p3122_p1 = por %p3121_p0, %p3120_p13 }
  0x78   :  { %v181_v47 = vpack.c.bf16 %v179_v45, %v178_v44  ;;  %v2832_v59 = vld [vmem:[#allocation12 + $0x40] sm:$0xff]   ;;  %v2831_v60 = vld [vmem:[#allocation12 + $0x8] sm:$0xff]   ;;  %v2835_v63 = vld [vmem:[#allocation14 + $0x38] sm:$0xff]  }
  0x79   :  { %v2833_v61 = vld [vmem:[#allocation12] sm:$0xff]   ;;  %v486_v4 = vld [vmem:[#allocation11] sm:$0x3]  ;;  %p3123_p2 = pnand %p3122_p1, %p3116_p12 }
  0x7a   :  { %311 = vmatpush1.bf16.msra.mxu0 %v2804_v24  ;;  %444 = vmatpush1.bf16.msra.mxu1 %v2805_v25  ;;  %v491_v6 = vrot.slane %v486_v4, %v3288_v3  ;;  %v3295_v10 = vrot.slane %v486_v4, %v3291_v5 }
  0x7b   :  { %312 = vmatprep.subr.bf16.mxu0 %v2806_v26  ;;  %445 = vmatprep.subr.bf16.mxu1 %v2808_v27 }
  0x7e   :  { %313 = vmatpush1.bf16.msra.mxu0 %v2810_v30  ;;  %446 = vmatpush1.bf16.msra.mxu1 %v2811_v31 }
  0x7f   :  { %314 = vmatprep.subr.bf16.mxu0 %v2812_v34  ;;  %447 = vmatprep.subr.bf16.mxu1 %v2814_v35 }
  0x82   :  { %315 = vmatpush1.bf16.msra.mxu0 %v2816_v36  ;;  %448 = vmatpush1.bf16.msra.mxu1 %v2817_v37 }
  0x83   :  { %2542 = vmatprep.subr.bf16.mxu0 %v2818_v38  ;;  %2562 = vmatprep.subr.bf16.mxu1 %v2819_v39 }
  0x85   :  { %333 = vmatmul.mubr.bf16.vlgmr.msra.gmra.mxu0 %v202_v42  ;;  %466 = vmatmul.mubr.bf16.vlgmr.msra.gmra.mxu1 %v180_v43 }
  0x86   :  { %342 = vmatprep.mubr.bf16.mxu0 %v3161_v0  ;;  %475 = vmatprep.mubr.bf16.mxu1 %v3161_v0 }
  0x87   :  { %2543 = vmatpush3.bf16.msra.mxu0 %v2818_v38  ;;  %2563 = vmatpush3.bf16.msra.mxu1 %v2819_v39 }
  0x88   :  { %2544 = vmatprep.subr.bf16.mxu0 %v2820_v48  ;;  %2564 = vmatprep.subr.bf16.mxu1 %v2821_v50 }
  0x8b   :  { %2545 = vmatpush3.bf16.msra.mxu0 %v2820_v48  ;;  %2565 = vmatpush3.bf16.msra.mxu1 %v2821_v50  ;;  %v2836_v48 = vld [vmem:[#allocation14 + $0x70] sm:$0xff]  }
  0x8c   :  { %2546 = vmatprep.subr.bf16.mxu0 %v2822_v49  ;;  %2566 = vmatprep.subr.bf16.mxu1 %v2823_v52  ;;  %v2837_v50 = vld [vmem:[#allocation14 + $0x30] sm:$0xff]  }
  0x8d   :  { %343 = vmatmul.mubr.bf16.gmra.mxu0 %v203_v46  ;;  %476 = vmatmul.mubr.bf16.gmra.mxu1 %v181_v47 }
  0x8f   :  { %2547 = vmatpush3.bf16.msra.mxu0 %v2822_v49  ;;  %2567 = vmatpush3.bf16.msra.mxu1 %v2823_v52  ;;  %v2838_v49 = vld [vmem:[#allocation14 + $0x68] sm:$0xff]  }
  0x90   :  { %2548 = vmatprep.subr.bf16.mxu0 %v2824_v51  ;;  %2568 = vmatprep.subr.bf16.mxu1 %v2825_v54  ;;  %v2839_v52 = vld [vmem:[#allocation14 + $0x28] sm:$0xff]  }
  0x93   :  { %2549 = vmatpush3.bf16.msra.mxu0 %v2824_v51  ;;  %2569 = vmatpush3.bf16.msra.mxu1 %v2825_v54  ;;  %v2840_v51 = vld [vmem:[#allocation14 + $0x60] sm:$0xff]  }
  0x94   :  { %2550 = vmatprep.subr.bf16.mxu0 %v2826_v53  ;;  %2570 = vmatprep.subr.bf16.mxu1 %v2827_v56  ;;  %v2841_v54 = vld [vmem:[#allocation14 + $0x20] sm:$0xff]  }
  0x97   :  { %2551 = vmatpush3.bf16.msra.mxu0 %v2826_v53  ;;  %2571 = vmatpush3.bf16.msra.mxu1 %v2827_v56  ;;  %v2842_v53 = vld [vmem:[#allocation14 + $0x58] sm:$0xff]  }
  0x98   :  { %2552 = vmatprep.subr.bf16.mxu0 %v2828_v55  ;;  %2572 = vmatprep.subr.bf16.mxu1 %v2829_v58  ;;  %v2843_v56 = vld [vmem:[#allocation14 + $0x18] sm:$0xff]  }
  0x9b   :  { %2553 = vmatpush3.bf16.msra.mxu0 %v2828_v55  ;;  %2573 = vmatpush3.bf16.msra.mxu1 %v2829_v58  ;;  %v2844_v55 = vld [vmem:[#allocation14 + $0x50] sm:$0xff]  }
  0x9c   :  { %2554 = vmatprep.subr.bf16.mxu0 %v2830_v57  ;;  %2574 = vmatprep.subr.bf16.mxu1 %v2831_v60  ;;  %v2845_v58 = vld [vmem:[#allocation14 + $0x10] sm:$0xff]  }
  0x9f   :  { %2555 = vmatpush3.bf16.msra.mxu0 %v2830_v57  ;;  %2575 = vmatpush3.bf16.msra.mxu1 %v2831_v60  ;;  %v2846_v57 = vld [vmem:[#allocation14 + $0x48] sm:$0xff]  }
  0xa0   :  { %2556 = vmatprep.subr.bf16.mxu0 %v2832_v59  ;;  %2576 = vmatprep.subr.bf16.mxu1 %v2833_v61  ;;  %v2847_v60 = vld [vmem:[#allocation14 + $0x8] sm:$0xff]  }
  0xa3   :  { %2557 = vmatpush3.bf16.msra.mxu0 %v2832_v59  ;;  %2577 = vmatpush3.bf16.msra.mxu1 %v2833_v61  ;;  %v2848_v59 = vld [vmem:[#allocation14 + $0x40] sm:$0xff]  }
  0xa4   :  { %2582 = vmatprep.subr.bf16.mxu0 %v2834_v62  ;;  %2602 = vmatprep.subr.bf16.mxu1 %v2835_v63  ;;  %v2849_v61 = vld [vmem:[#allocation14] sm:$0xff]  }
 0x145   :  { %v334_v7 = vpop.f32.mrf.mxu0  ;;  %v467_v8 = vpop.f32.mrf.mxu1 }
 0x146   :  { %v468_v9 = vadd.f32 %v467_v8, %v334_v7 }
 0x147   :  { %v336_v11 = vpop.f32.mrf.mxu0  ;;  %v469_v12 = vpop.f32.mrf.mxu1 }
 0x148   :  { %v498_v13 = vadd.f32 %v491_v6, %v468_v9  ;;  %v470_v14 = vadd.f32 %v469_v12, %v336_v11  ;;  %v2359_v9 = vld [vmem:[%s3410_s4] ss:$0 sm:$0xff] }
 0x149   :  { %v338_v15 = vpop.f32.mrf.mxu0  ;;  %v471_v16 = vpop.f32.mrf.mxu1 }
 0x14a   :  { %v506_v17 = vmax.f32 %v498_v13, 0.0  ;;  %v3298_v18 = vadd.f32 %v3295_v10, %v470_v14  ;;  %v472_v19 = vadd.f32 %v471_v16, %v338_v15 }
 0x14b   :  { %v340_v20 = vpop.f32.mrf.mxu0  ;;  %v473_v21 = vpop.f32.mrf.mxu1 }
 0x14c   :  { %510 = vst [vmem:[#allocation3 + $0x8] sm:$0xff] %v506_v17  ;;  %v500_v22 = vadd.f32 %v491_v6, %v472_v19  ;;  %v474_v23 = vadd.f32 %v473_v21, %v340_v20 }
 0x14d   :  { %v344_v24 = vpop.f32.mrf.mxu0  ;;  %v477_v25 = vpop.f32.mrf.mxu1 }
 0x14e   :  { %v507_v26 = vmax.f32 %v500_v22, 0.0  ;;  %v3301_v27 = vadd.f32 %v3295_v10, %v474_v23  ;;  %v478_v28 = vadd.f32 %v477_v25, %v344_v24 }
 0x14f   :  { %v346_v29 = vpop.f32.mrf.mxu0  ;;  %v479_v30 = vpop.f32.mrf.mxu1 }
 0x150   :  { %511 = vst [vmem:[#allocation3 + $0x10] sm:$0xff] %v507_v26  ;;  %v502_v31 = vadd.f32 %v491_v6, %v478_v28  ;;  %v480_v32 = vadd.f32 %v479_v30, %v346_v29  ;;  %v540_v33 = vpack.c.bf16 %v507_v26, %v506_v17 }
 0x151   :  { %v348_v34 = vpop.f32.mrf.mxu0  ;;  %v481_v35 = vpop.f32.mrf.mxu1 }
 0x152   :  { %v508_v36 = vmax.f32 %v502_v31, 0.0  ;;  %v3304_v37 = vadd.f32 %v3295_v10, %v480_v32  ;;  %v482_v38 = vadd.f32 %v481_v35, %v348_v34  ;;  %2558 = vmatprep.mubr.bf16.mxu0 %v540_v33 }
 0x153   :  { %v514_v41 = vld [vmem:[#allocation3 + $0x7] sm:$0xff]  ;;  %v350_v1 = vpop.f32.mrf.mxu0 }
 0x154   :  { %512 = vst [vmem:[#allocation3 + $0x20] sm:$0xff] %v508_v36  ;;  %v504_v39 = vadd.f32 %v491_v6, %v482_v38  ;;  %v483_v6 = vpop.f32.mrf.mxu1 }
 0x155   :  { %v484_v16 = vadd.f32 %v483_v6, %v350_v1  ;;  %v2376_v1 = vld [vmem:[%s3412_s6] ss:$0 sm:$0xff] }
 0x156   :  { %v509_v40 = vmax.f32 %v504_v39, 0.0 }
 0x157   :  { %v515_v42 = vld [vmem:[#allocation3 + $0xf] sm:$0xff]  ;;  %v505_v29 = vadd.f32 %v3295_v10, %v484_v16 }
 0x158   :  { %513 = vst [vmem:[#allocation3 + $0x28] sm:$0xff] %v509_v40  ;;  %v518_v43 = vpack.c.bf16 %v515_v42, %v514_v41  ;;  %v541_v44 = vpack.c.bf16 %v509_v40, %v508_v36  ;;  %v2852_v40 = vld [vmem:[#allocation15 + $0x70] sm:$0xff]  }
 0x15a   :  { %2578 = vmatprep.mubr.bf16.mxu1 %v518_v43  ;;  %2559 = vmatmul.mubr.bf16.vlgmr.msra.gmra.mxu0 %v541_v44 }
 0x15b   :  { %2583 = vmatpush3.bf16.msra.mxu0 %v2834_v62  ;;  %v516_v45 = vld [vmem:[#allocation3 + $0x1f] sm:$0xff]  ;;  %v2850_v62 = vld [vmem:[#allocation15 + $0x78] sm:$0xff]  }
 0x15c   :  { %2584 = vmatprep.subr.bf16.mxu0 %v2836_v48 }
 0x15f   :  { %v517_v46 = vld [vmem:[#allocation3 + $0x27] sm:$0xff]  ;;  %2585 = vmatpush3.bf16.msra.mxu0 %v2836_v48  ;;  %v2856_v48 = vld [vmem:[#allocation15 + $0x60] sm:$0xff]  }
 0x160   :  { %v519_v47 = vpack.c.bf16 %v517_v46, %v516_v45  ;;  %2586 = vmatprep.subr.bf16.mxu0 %v2838_v49  ;;  %v2853_v46 = vld [vmem:[#allocation15 + $0x30] sm:$0xff]  }
 0x162   :  { %2579 = vmatmul.mubr.bf16.vlgmr.msra.gmra.mxu1 %v519_v47  ;;  %v2854_v47 = vld [vmem:[#allocation15 + $0x68] sm:$0xff]  }
 0x163   :  { %2603 = vmatpush3.bf16.msra.mxu1 %v2835_v63  ;;  %2587 = vmatpush3.bf16.msra.mxu0 %v2838_v49  ;;  %v2851_v63 = vld [vmem:[#allocation15 + $0x38] sm:$0xff]   ;;  %v2855_v49 = vld [vmem:[#allocation15 + $0x28] sm:$0xff]  }
 0x164   :  { %2604 = vmatprep.subr.bf16.mxu1 %v2837_v50  ;;  %2588 = vmatprep.subr.bf16.mxu0 %v2840_v51 }
 0x167   :  { %2605 = vmatpush3.bf16.msra.mxu1 %v2837_v50  ;;  %2589 = vmatpush3.bf16.msra.mxu0 %v2840_v51  ;;  %v2858_v50 = vld [vmem:[#allocation15 + $0x58] sm:$0xff]   ;;  %v2857_v51 = vld [vmem:[#allocation15 + $0x20] sm:$0xff]  }
 0x168   :  { %2606 = vmatprep.subr.bf16.mxu1 %v2839_v52  ;;  %2590 = vmatprep.subr.bf16.mxu0 %v2842_v53 }
 0x16b   :  { %2607 = vmatpush3.bf16.msra.mxu1 %v2839_v52  ;;  %2591 = vmatpush3.bf16.msra.mxu0 %v2842_v53  ;;  %v2860_v52 = vld [vmem:[#allocation15 + $0x50] sm:$0xff]   ;;  %v2859_v53 = vld [vmem:[#allocation15 + $0x18] sm:$0xff]  }
 0x16c   :  { %2608 = vmatprep.subr.bf16.mxu1 %v2841_v54  ;;  %2592 = vmatprep.subr.bf16.mxu0 %v2844_v55 }
 0x16f   :  { %2609 = vmatpush3.bf16.msra.mxu1 %v2841_v54  ;;  %2593 = vmatpush3.bf16.msra.mxu0 %v2844_v55  ;;  %v2862_v54 = vld [vmem:[#allocation15 + $0x48] sm:$0xff]   ;;  %v2861_v55 = vld [vmem:[#allocation15 + $0x10] sm:$0xff]  }
 0x170   :  { %2610 = vmatprep.subr.bf16.mxu1 %v2843_v56  ;;  %2594 = vmatprep.subr.bf16.mxu0 %v2846_v57 }
 0x173   :  { %2611 = vmatpush3.bf16.msra.mxu1 %v2843_v56  ;;  %2595 = vmatpush3.bf16.msra.mxu0 %v2846_v57  ;;  %v2864_v56 = vld [vmem:[#allocation15 + $0x40] sm:$0xff]   ;;  %v2863_v57 = vld [vmem:[#allocation15 + $0x8] sm:$0xff]  }
 0x174   :  { %2612 = vmatprep.subr.bf16.mxu1 %v2845_v58  ;;  %2596 = vmatprep.subr.bf16.mxu0 %v2848_v59 }
 0x177   :  { %2613 = vmatpush3.bf16.msra.mxu1 %v2845_v58  ;;  %2597 = vmatpush3.bf16.msra.mxu0 %v2848_v59  ;;  %v2865_v58 = vld [vmem:[#allocation15] sm:$0xff]   ;;  %v2868_v59 = vld [vmem:[#allocation17 + $0xac] ss:$12 sps:$4 sm:$0xff]  }
 0x178   :  { %2614 = vmatprep.subr.bf16.mxu1 %v2847_v60  ;;  %2622 = vmatprep.subr.bf16.mxu0 %v2850_v62 }
 0x17b   :  { %2615 = vmatpush3.bf16.msra.mxu1 %v2847_v60  ;;  %v2869_v60 = vld [vmem:[#allocation17 + $0xb0] ss:$12 sps:$4 sm:$0xff]  }
 0x17c   :  { %2616 = vmatprep.subr.bf16.mxu1 %v2849_v61 }
 0x17f   :  { %2617 = vmatpush3.bf16.msra.mxu1 %v2849_v61 }
 0x180   :  { %2642 = vmatprep.subr.bf16.mxu1 %v2851_v63 }
 0x21a   :  { %v2560_v4 = vpop.f32.mrf.mxu0 }
 0x21c   :  { %v640_v7 = vpop.f32.mrf.mxu0 }
 0x21e   :  { %v2561_v13 = vpop.f32.mrf.mxu0 }
 0x220   :  { %v643_v22 = vpop.f32.mrf.mxu0 }
 0x222   :  { %v2580_v8 = vpop.f32.mrf.mxu1 }
 0x223   :  { %v746_v11 = vadd.f32 %v2580_v8, %v2560_v4 }
 0x224   :  { %v737_v12 = vpop.f32.mrf.mxu1 }
 0x225   :  { %v761_v14 = vadd.f32 %v2359_v9, %v746_v11  ;;  %v738_v15 = vadd.f32 %v737_v12, %v640_v7 }
 0x226   :  { %v2581_v17 = vpop.f32.mrf.mxu1 }
 0x227   :  { %v765_v19 = vmax.f32 %v761_v14, 0.0  ;;  %v759_v20 = vadd.f32 %v2359_v9, %v738_v15  ;;  %v749_v21 = vadd.f32 %v2581_v17, %v2561_v13 }
 0x228   :  { %v740_v23 = vpop.f32.mrf.mxu1 }
 0x229   :  { %v769_v24 = vadd.f32 %v765_v19, %v3304_v37  ;;  %v763_v25 = vmax.f32 %v759_v20, 0.0  ;;  %v762_v26 = vadd.f32 %v2359_v9, %v749_v21  ;;  %v741_v28 = vadd.f32 %v740_v23, %v643_v22 }
 0x22b   :  { %v3311_v30 = vmax.f32 %v769_v24, 0.0  ;;  %v767_v31 = vadd.f32 %v763_v25, %v3298_v18  ;;  %v766_v32 = vmax.f32 %v762_v26, 0.0  ;;  %v760_v33 = vadd.f32 %v2359_v9, %v741_v28  ;;  %v2866_v25 = vld [vmem:[#allocation17 + $0xa8] ss:$12 sps:$4 sm:$0xff]  }
 0x22c   :  { %v2872_v28 = vld [vmem:[#allocation17 + $0x94] ss:$12 sps:$4 sm:$0xff]  }
 0x22d   :  { %777 = vst [vmem:[#allocation4 + $0x20] sm:$0xff] %v3311_v30  ;;  %v3315_v34 = vmax.f32 %v767_v31, 0.0  ;;  %v770_v35 = vadd.f32 %v766_v32, %v505_v29  ;;  %v764_v36 = vmax.f32 %v760_v33, 0.0  ;;  %v2870_v29 = vld [vmem:[#allocation17 + $0x90] ss:$12 sps:$4 sm:$0xff]  }
 0x22e   :  { %v2876_v31 = vld [vmem:[#allocation17 + $0x7c] ss:$12 sps:$4 sm:$0xff]  }
 0x22f   :  { %775 = vst [vmem:[#allocation4 + $0x8] sm:$0xff] %v3315_v34  ;;  %v3318_v37 = vmax.f32 %v770_v35, 0.0  ;;  %v768_v38 = vadd.f32 %v764_v36, %v3301_v27 }
 0x231   :  { %778 = vst [vmem:[#allocation4 + $0x28] sm:$0xff] %v3318_v37  ;;  %v3322_v10 = vmax.f32 %v768_v38, 0.0  ;;  %v806_v39 = vpack.c.bf16 %v3318_v37, %v3311_v30 }
 0x233   :  { %776 = vst [vmem:[#allocation4 + $0x10] sm:$0xff] %v3322_v10  ;;  %v805_v18 = vpack.c.bf16 %v3322_v10, %v3315_v34 }
 0x234   :  { %v781_v44 = vld [vmem:[#allocation4 + $0x1e] sm:$0xff] }
 0x235   :  { %2598 = vmatprep.mubr.bf16.mxu0 %v805_v18  ;;  %v2874_v18 = vld [vmem:[#allocation17 + $0x78] ss:$12 sps:$4 sm:$0xff]  }
 0x236   :  { %2599 = vmatmul.mubr.bf16.vlgmr.msra.gmra.mxu0 %v806_v39  ;;  %v779_v42 = vld [vmem:[#allocation4 + $0x6] sm:$0xff] }
 0x237   :  { %2623 = vmatpush3.bf16.msra.mxu0 %v2850_v62 }
 0x238   :  { %2624 = vmatprep.subr.bf16.mxu0 %v2852_v40  ;;  %v782_v41 = vld [vmem:[#allocation4 + $0x26] sm:$0xff] }
 0x239   :  { %v784_v45 = vpack.c.bf16 %v782_v41, %v781_v44  ;;  %v2880_v41 = vld [vmem:[#allocation17 + $0x64] ss:$12 sps:$4 sm:$0xff]   ;;  %v2884_v44 = vld [vmem:[#allocation17 + $0x4c] ss:$12 sps:$4 sm:$0xff]  }
 0x23a   :  { %v780_v27 = vld [vmem:[#allocation4 + $0xe] sm:$0xff] }
 0x23b   :  { %v783_v43 = vpack.c.bf16 %v780_v27, %v779_v42  ;;  %2625 = vmatpush3.bf16.msra.mxu0 %v2852_v40  ;;  %v2873_v40 = vld [vmem:[#allocation17 + $0x98] ss:$12 sps:$4 sm:$0xff]   ;;  %v2878_v42 = vld [vmem:[#allocation17 + $0x60] ss:$12 sps:$4 sm:$0xff]  }
 0x23c   :  { %2626 = vmatprep.subr.bf16.mxu0 %v2854_v47  ;;  %v2877_v27 = vld [vmem:[#allocation17 + $0x80] ss:$12 sps:$4 sm:$0xff]  }
 0x23d   :  { %2618 = vmatprep.mubr.bf16.mxu1 %v783_v43  ;;  %v2881_v43 = vld [vmem:[#allocation17 + $0x68] ss:$12 sps:$4 sm:$0xff]  }
 0x23e   :  { %2619 = vmatmul.mubr.bf16.vlgmr.msra.gmra.mxu1 %v784_v45  ;;  %v2882_v45 = vld [vmem:[#allocation17 + $0x48] ss:$12 sps:$4 sm:$0xff]  }
 0x23f   :  { %2643 = vmatpush3.bf16.msra.mxu1 %v2851_v63  ;;  %2627 = vmatpush3.bf16.msra.mxu0 %v2854_v47  ;;  %v2888_v47 = vld [vmem:[#allocation17 + $0x34] ss:$12 sps:$4 sm:$0xff]  }
 0x240   :  { %2644 = vmatprep.subr.bf16.mxu1 %v2853_v46  ;;  %2628 = vmatprep.subr.bf16.mxu0 %v2856_v48 }
 0x243   :  { %2645 = vmatpush3.bf16.msra.mxu1 %v2853_v46  ;;  %2629 = vmatpush3.bf16.msra.mxu0 %v2856_v48  ;;  %v2885_v46 = vld [vmem:[#allocation17 + $0x50] ss:$12 sps:$4 sm:$0xff]  }
 0x244   :  { %2646 = vmatprep.subr.bf16.mxu1 %v2855_v49  ;;  %2630 = vmatprep.subr.bf16.mxu0 %v2858_v50  ;;  %v2886_v48 = vld [vmem:[#allocation17 + $0x30] ss:$12 sps:$4 sm:$0xff]  }
 0x247   :  { %2647 = vmatpush3.bf16.msra.mxu1 %v2855_v49  ;;  %2631 = vmatpush3.bf16.msra.mxu0 %v2858_v50  ;;  %v2889_v49 = vld [vmem:[#allocation17 + $0x38] ss:$12 sps:$4 sm:$0xff]   ;;  %v2892_v50 = vld [vmem:[#allocation17 + $0x1c] ss:$12 sps:$4 sm:$0xff]  }
 0x248   :  { %2648 = vmatprep.subr.bf16.mxu1 %v2857_v51  ;;  %2632 = vmatprep.subr.bf16.mxu0 %v2860_v52 }
 0x24b   :  { %2649 = vmatpush3.bf16.msra.mxu1 %v2857_v51  ;;  %2633 = vmatpush3.bf16.msra.mxu0 %v2860_v52  ;;  %v2890_v51 = vld [vmem:[#allocation17 + $0x18] ss:$12 sps:$4 sm:$0xff]   ;;  %v2893_v52 = vld [vmem:[#allocation17 + $0x20] ss:$12 sps:$4 sm:$0xff]  }
 0x24c   :  { %2650 = vmatprep.subr.bf16.mxu1 %v2859_v53  ;;  %2634 = vmatprep.subr.bf16.mxu0 %v2862_v54 }
 0x24f   :  { %2651 = vmatpush3.bf16.msra.mxu1 %v2859_v53  ;;  %2635 = vmatpush3.bf16.msra.mxu0 %v2862_v54  ;;  %v2896_v53 = vld [vmem:[#allocation17 + $0x4] ss:$12 sps:$4 sm:$0xff]   ;;  %v2894_v54 = vld [vmem:[#allocation17] ss:$12 sps:$4 sm:$0xff]  }
 0x250   :  { %2652 = vmatprep.subr.bf16.mxu1 %v2861_v55  ;;  %2636 = vmatprep.subr.bf16.mxu0 %v2864_v56 }
 0x253   :  { %2653 = vmatpush3.bf16.msra.mxu1 %v2861_v55  ;;  %2637 = vmatpush3.bf16.msra.mxu0 %v2864_v56  ;;  %v2897_v55 = vld [vmem:[#allocation17 + $0x8] ss:$12 sps:$4 sm:$0xff]   ;;  %v3333_v56 = vld [vmem:[#allocation2] sm:$0xff] }
 0x254   :  { %2654 = vmatprep.subr.bf16.mxu1 %v2863_v57  ;;  %1476 = vmatprep.subr.bf16.mxu0 %v2868_v59 }
 0x257   :  { %2655 = vmatpush3.bf16.msra.mxu1 %v2863_v57 }
 0x258   :  { %2656 = vmatprep.subr.bf16.mxu1 %v2865_v58 }
 0x25b   :  { %2657 = vmatpush3.bf16.msra.mxu1 %v2865_v58 }
 0x25c   :  { %2662 = vmatprep.subr.bf16.mxu1 %v2869_v60 }
 0x2f6   :  { %v2600_v61 = vpop.f32.mrf.mxu0 }
 0x2f8   :  { %v905_v62 = vpop.f32.mrf.mxu0 }
 0x2fa   :  { %v2601_v7 = vpop.f32.mrf.mxu0 }
 0x2fc   :  { %v908_v15 = vpop.f32.mrf.mxu0 }
 0x2fe   :  { %v2620_v63 = vpop.f32.mrf.mxu1 }
 0x2ff   :  { %v1011_v4 = vadd.f32 %v2620_v63, %v2600_v61  ;;  %v2393_v61 = vld [vmem:[%s3414_s8] ss:$0 sm:$0xff] }
 0x300   :  { %v1002_v6 = vpop.f32.mrf.mxu1 }
 0x301   :  { %v1026_v8 = vadd.f32 %v2376_v1, %v1011_v4  ;;  %v1003_v9 = vadd.f32 %v1002_v6, %v905_v62 }
 0x302   :  { %v2621_v11 = vpop.f32.mrf.mxu1 }
 0x303   :  { %v1030_v12 = vmax.f32 %v1026_v8, 0.0  ;;  %v1024_v13 = vadd.f32 %v2376_v1, %v1003_v9  ;;  %v1014_v14 = vadd.f32 %v2621_v11, %v2601_v7 }
 0x304   :  { %v1005_v16 = vpop.f32.mrf.mxu1 }
 0x305   :  { %1034 = vst [vmem:[#allocation5 + $0x20] sm:$0xff] %v1030_v12  ;;  %v1028_v17 = vmax.f32 %v1024_v13, 0.0  ;;  %v1027_v19 = vadd.f32 %v2376_v1, %v1014_v14  ;;  %v1006_v20 = vadd.f32 %v1005_v16, %v908_v15 }
 0x307   :  { %1032 = vst [vmem:[#allocation5 + $0x8] sm:$0xff] %v1028_v17  ;;  %v1031_v21 = vmax.f32 %v1027_v19, 0.0  ;;  %v1025_v22 = vadd.f32 %v2376_v1, %v1006_v20 }
 0x309   :  { %1035 = vst [vmem:[#allocation5 + $0x28] sm:$0xff] %v1031_v21  ;;  %v1029_v23 = vmax.f32 %v1025_v22, 0.0  ;;  %v1063_v26 = vpack.c.bf16 %v1031_v21, %v1030_v12 }
 0x30b   :  { %1033 = vst [vmem:[#allocation5 + $0x10] sm:$0xff] %v1029_v23  ;;  %v1062_v24 = vpack.c.bf16 %v1029_v23, %v1028_v17 }
 0x30c   :  { %v1038_v38 = vld [vmem:[#allocation5 + $0x1e] sm:$0xff] }
 0x30d   :  { %2638 = vmatprep.mubr.bf16.mxu0 %v1062_v24 }
 0x30e   :  { %2639 = vmatmul.mubr.bf16.vlgmr.msra.gmra.mxu0 %v1063_v26  ;;  %v1036_v33 = vld [vmem:[#allocation5 + $0x6] sm:$0xff] }
 0x30f   :  { %1477 = vmatpush1.bf16.msra.mxu0 %v2866_v25  ;;  %1508 = vmatprep.mubr.bf16.mxu0 %v3161_v0 }
 0x310   :  { %1478 = vmatprep.subr.bf16.mxu0 %v2872_v28  ;;  %v1039_v32 = vld [vmem:[#allocation5 + $0x26] sm:$0xff] }
 0x311   :  { %v1041_v39 = vpack.c.bf16 %v1039_v32, %v1038_v38 }
 0x312   :  { %v1037_v35 = vld [vmem:[#allocation5 + $0xe] sm:$0xff] }
 0x313   :  { %v1040_v36 = vpack.c.bf16 %v1037_v35, %v1036_v33  ;;  %1479 = vmatpush1.bf16.msra.mxu0 %v2870_v29 }
 0x314   :  { %1480 = vmatprep.subr.bf16.mxu0 %v2876_v31 }
 0x315   :  { %2658 = vmatprep.mubr.bf16.mxu1 %v1040_v36 }
 0x316   :  { %2659 = vmatmul.mubr.bf16.vlgmr.msra.gmra.mxu1 %v1041_v39 }
 0x317   :  { %2663 = vmatpush3.bf16.msra.mxu1 %v2869_v60  ;;  %1481 = vmatpush1.bf16.msra.mxu0 %v2874_v18  ;;  %v1343_v18 = vsub.s32 2, %v3285_v2 }
 0x318   :  { %2664 = vmatprep.subr.bf16.mxu1 %v2873_v40  ;;  %1482 = vmatprep.subr.bf16.mxu0 %v2880_v41 }
 0x31b   :  { %2665 = vmatpush3.bf16.msra.mxu1 %v2873_v40  ;;  %1483 = vmatpush1.bf16.msra.mxu0 %v2878_v42 }
 0x31c   :  { %2666 = vmatprep.subr.bf16.mxu1 %v2877_v27  ;;  %1484 = vmatprep.subr.bf16.mxu0 %v2884_v44 }
 0x31f   :  { %2667 = vmatpush3.bf16.msra.mxu1 %v2877_v27  ;;  %1485 = vmatpush1.bf16.msra.mxu0 %v2882_v45 }
 0x320   :  { %2668 = vmatprep.subr.bf16.mxu1 %v2881_v43  ;;  %1486 = vmatprep.subr.bf16.mxu0 %v2888_v47 }
 0x323   :  { %2669 = vmatpush3.bf16.msra.mxu1 %v2881_v43  ;;  %1487 = vmatpush1.bf16.msra.mxu0 %v2886_v48 }
 0x324   :  { %2670 = vmatprep.subr.bf16.mxu1 %v2885_v46  ;;  %1488 = vmatprep.subr.bf16.mxu0 %v2892_v50 }
 0x327   :  { %2671 = vmatpush3.bf16.msra.mxu1 %v2885_v46  ;;  %1489 = vmatpush1.bf16.msra.mxu0 %v2890_v51 }
 0x328   :  { %2672 = vmatprep.subr.bf16.mxu1 %v2889_v49  ;;  %1490 = vmatprep.subr.bf16.mxu0 %v2896_v53 }
 0x32b   :  { %2673 = vmatpush3.bf16.msra.mxu1 %v2889_v49  ;;  %1491 = vmatpush1.bf16.msra.mxu0 %v2894_v54 }
 0x32c   :  { %2674 = vmatprep.subr.bf16.mxu1 %v2893_v52  ;;  %2688 = vmatprep.subr.bf16.mxu0 %v3333_v56 }
 0x32f   :  { %2675 = vmatpush3.bf16.msra.mxu1 %v2893_v52 }
 0x330   :  { %2676 = vmatprep.subr.bf16.mxu1 %v2897_v55 }
 0x333   :  { %2677 = vmatpush3.bf16.msra.mxu1 %v2897_v55 }
 0x334   :  { %2682 = vmatprep.subr.bf16.mxu1 %v3333_v56 }
 0x3ce   :  { %v2640_v57 = vpop.f32.mrf.mxu0 }
 0x3d0   :  { %v1162_v58 = vpop.f32.mrf.mxu0 }
 0x3d2   :  { %v2641_v63 = vpop.f32.mrf.mxu0 }
 0x3d4   :  { %v1165_v9 = vpop.f32.mrf.mxu0 }
 0x3d6   :  { %v2660_v59 = vpop.f32.mrf.mxu1 }
 0x3d7   :  { %v1268_v60 = vadd.f32 %v2660_v59, %v2640_v57 }
 0x3d8   :  { %v1259_v62 = vpop.f32.mrf.mxu1 }
 0x3d9   :  { %v1260_v1 = vadd.f32 %v1259_v62, %v1162_v58  ;;  %v1283_v4 = vadd.f32 %v2393_v61, %v1268_v60 }
 0x3da   :  { %v2661_v6 = vpop.f32.mrf.mxu1 }
 0x3db   :  { %v1281_v7 = vadd.f32 %v2393_v61, %v1260_v1  ;;  %v1271_v8 = vadd.f32 %v2661_v6, %v2641_v63  ;;  %v1287_v15 = vmax.f32 %v1283_v4, 0.0 }
 0x3dc   :  { %v1262_v11 = vpop.f32.mrf.mxu1 }
 0x3dd   :  { %v1285_v12 = vmax.f32 %v1281_v7, 0.0  ;;  %v1284_v13 = vadd.f32 %v2393_v61, %v1271_v8  ;;  %v1263_v14 = vadd.f32 %v1262_v11, %v1165_v9  ;;  %v1291_v22 = vadd.f32 %v1287_v15, %v3311_v30 }
 0x3df   :  { %v1288_v16 = vmax.f32 %v1284_v13, 0.0  ;;  %v1282_v17 = vadd.f32 %v2393_v61, %v1263_v14  ;;  %v1289_v19 = vadd.f32 %v1285_v12, %v3315_v34  ;;  %v1295_v28 = vmax.f32 %v1291_v22, 0.0 }
 0x3e1   :  { %v1292_v20 = vadd.f32 %v1288_v16, %v3318_v37  ;;  %v1286_v21 = vmax.f32 %v1282_v17, 0.0  ;;  %v1293_v25 = vmax.f32 %v1289_v19, 0.0  ;;  %v1331_v37 = vld [vmem:[%s3416_s10] sm:$0x7] }
 0x3e2   :  { %v1340_v32 = vrot.slane %v1331_v37, %v3291_v5  ;;  %v1336_v27 = vrot.slane %v1331_v37, %v3288_v3  ;;  %v1344_v45 = vrot.slane %v1331_v37, %v1343_v18 }
 0x3e3   :  { %v1290_v23 = vadd.f32 %v1286_v21, %v3322_v10  ;;  %v1296_v24 = vmax.f32 %v1292_v20, 0.0 }
 0x3e5   :  { %v1294_v26 = vmax.f32 %v1290_v23, 0.0  ;;  %v1298_v31 = vpack.c.bf16 %v1296_v24, %v1295_v28 }
 0x3e7   :  { %v1297_v29 = vpack.c.bf16 %v1294_v26, %v1293_v25 }
 0x3e9   :  { %1509 = vmatmul.mubr.bf16.vlgmr.msra.gmra.mxu0 %v1297_v29  ;;  %2678 = vmatprep.mubr.bf16.mxu1 %v1297_v29 }
 0x3ea   :  { %2679 = vmatmul.mubr.bf16.vlgmr.msra.gmra.mxu1 %v1298_v31  ;;  %1518 = vmatprep.mubr.bf16.mxu0 %v3161_v0 }
 0x3eb   :  { %2684 = vmatprep.mubr.msk.bf16.mxu1 %vm3163_vm0, %v3333_v56 }
 0x3f1   :  { %1519 = vmatmul.mubr.bf16.gmra.mxu0 %v1298_v31 }
 0x3f2   :  { %2690 = vmatprep.mubr.msk.bf16.mxu0 %vm3163_vm0, %v3333_v56 }
 0x4a9   :  { %v1510_v30 = vpop.f32.mrf.mxu0 }
 0x4aa   :  { %v2680_v34 = vpop.f32.mrf.mxu1  ;;  %v1511_v49 = vadd.f32 %v1510_v30, %v1336_v27 }
 0x4ab   :  { %v1512_v10 = vpop.f32.mrf.mxu0  ;;  %v1572_v61 = vadd.f32 %v2680_v34, %v1344_v45 }
 0x4ac   :  { %v1563_v33 = vpop.f32.mrf.mxu1  ;;  %v1513_v39 = vadd.f32 %v1512_v10, %v1340_v32 }
 0x4ad   :  { %v1514_v35 = vpop.f32.mrf.mxu0  ;;  %v1564_v51 = vadd.f32 %v1563_v33, %v1344_v45 }
 0x4ae   :  { %v2681_v36 = vpop.f32.mrf.mxu1  ;;  %v1515_v46 = vadd.f32 %v1514_v35, %v1336_v27 }
 0x4af   :  { %v1516_v38 = vpop.f32.mrf.mxu0  ;;  %v1575_v59 = vadd.f32 %v2681_v36, %v1344_v45 }
 0x4b0   :  { %v1517_v40 = vadd.f32 %v1516_v38, %v1340_v32  ;;  %v1566_v43 = vpop.f32.mrf.mxu1  ;;  %v1578_v54 = vpack.c.bf16 %v1515_v46, %v1511_v49  ;;  %v2900_v38 = vld [vmem:[#allocation18 + $0xac] ss:$12 sps:$4 sm:$0xff]   ;;  %v2903_v49 = vld [vmem:[#allocation18 + $0x94] ss:$12 sps:$4 sm:$0xff]  }
 0x4b1   :  { %v1520_v41 = vpop.f32.mrf.mxu0  ;;  %v1567_v48 = vadd.f32 %v1566_v43, %v1344_v45  ;;  %v1583_v63 = vpack.c.bf16 %v1575_v59, %v1572_v61  ;;  %v2910_v59 = vld [vmem:[#allocation18 + $0x64] ss:$12 sps:$4 sm:$0xff]   ;;  %v2908_v61 = vld [vmem:[#allocation18 + $0x60] ss:$12 sps:$4 sm:$0xff]  }
 0x4b2   :  { %v1580_v42 = vpack.c.bf16 %v1517_v40, %v1513_v39  ;;  %v1521_v60 = vadd.f32 %v1520_v41, %v1336_v27  ;;  %v2907_v39 = vld [vmem:[#allocation18 + $0xb0] ss:$12 sps:$4 sm:$0xff]  }
 0x4b3   :  { %v1522_v44 = vpop.f32.mrf.mxu0  ;;  %v1582_v55 = vpack.c.bf16 %v1567_v48, %v1564_v51  ;;  %v2901_v51 = vld [vmem:[#allocation18 + $0x90] ss:$12 sps:$4 sm:$0xff]  }
 0x4b4   :  { %2683 = vmatpush3.bf16.xpose.msra.mxu1 %v1580_v42  ;;  %v1523_v52 = vadd.f32 %v1522_v44, %v1340_v32 }
 0x4b5   :  { %v1524_v47 = vpop.f32.mrf.mxu0  ;;  %2694 = vmatprep.subr.bf16.mxu1 %v3333_v56 }
 0x4b6   :  { %v1525_v58 = vadd.f32 %v1524_v47, %v1336_v27  ;;  %v2898_v47 = vld [vmem:[#allocation18 + $0xa8] ss:$12 sps:$4 sm:$0xff]  }
 0x4b7   :  { %v1526_v50 = vpop.f32.mrf.mxu0 }
 0x4b8   :  { %v1527_v53 = vadd.f32 %v1526_v50, %v1340_v32  ;;  %v1579_v62 = vpack.c.bf16 %v1525_v58, %v1521_v60  ;;  %v2911_v60 = vld [vmem:[#allocation18 + $0x98] ss:$12 sps:$4 sm:$0xff]  }
 0x4ba   :  { %v1581_v57 = vpack.c.bf16 %v1527_v53, %v1523_v52  ;;  %v2906_v52 = vld [vmem:[#allocation18 + $0x7c] ss:$12 sps:$4 sm:$0xff]  }
 0x4bb   :  { %2685 = vmatmul.mubr.bf16.vlgmr.msra.gmra.mxu1 %v1578_v54 }
 0x4bc   :  { %2689 = vmatpush3.bf16.xpose.msra.mxu0 %v1581_v57  ;;  %2695 = vmatpush3.bf16.msra.mxu1 %v1582_v55  ;;  %v2904_v57 = vld [vmem:[#allocation18 + $0x78] ss:$12 sps:$4 sm:$0xff]  }
 0x4bd   :  { %2700 = vmatprep.subr.bf16.mxu0 %v3333_v56  ;;  %2696 = vmatprep.mubr.msk.bf16.mxu1 %vm3163_vm0, %v3333_v56 }
 0x4be   :  { %1980 = vmatprep.subr.bf16.mxu1 %v2900_v38 }
 0x4c3   :  { %2691 = vmatmul.mubr.bf16.vlgmr.msra.gmra.mxu0 %v1579_v62  ;;  %v2914_v62 = vld [vmem:[#allocation18 + $0x4c] ss:$12 sps:$4 sm:$0xff]  }
 0x4c4   :  { %2701 = vmatpush3.bf16.msra.mxu0 %v1583_v63  ;;  %2702 = vmatprep.mubr.msk.bf16.mxu0 %vm3163_vm0, %v3333_v56  ;;  %v2915_v63 = vld [vmem:[#allocation18 + $0x80] ss:$12 sps:$4 sm:$0xff]  }
 0x4c5   :  { %2706 = vmatprep.subr.bf16.mxu0 %v2907_v39 }
 0x57b   :  { %v1618_v1 = vpop.f32.mrf.mxu1 }
 0x57c   :  { %v1667_v4 = vsel %vm1666_vm1, %v1618_v1, -inf }
 0x57d   :  { %1668 = vmax.xlane.f32.xlu0 %v1667_v4  ;;  %v2686_v6 = vpop.f32.mrf.mxu1  ;;  %v2918_v4 = vld [vmem:[#allocation18 + $0x34] ss:$12 sps:$4 sm:$0xff]  }
 0x57e   :  { %v2919_v6 = vld [vmem:[#allocation18 + $0x68] ss:$12 sps:$4 sm:$0xff]  }
 0x57f   :  { %v1621_v7 = vpop.f32.mrf.mxu1 }
 0x580   :  { %v1670_v8 = vsel %vm1666_vm1, %v1621_v7, -inf }
 0x581   :  { %1671 = vmax.xlane.f32.xlu0 %v1670_v8  ;;  %v2687_v9 = vpop.f32.mrf.mxu1  ;;  %v2922_v8 = vld [vmem:[#allocation18 + $0x1c] ss:$12 sps:$4 sm:$0xff]  }
 0x582   :  { %v2923_v9 = vld [vmem:[#allocation18 + $0x50] ss:$12 sps:$4 sm:$0xff]  }
 0x583   :  { %v1659_v11 = vpop.f32.mrf.mxu0 }
 0x584   :  { %v1673_v12 = vsel %vm1666_vm1, %v1659_v11, -inf }
 0x585   :  { %1674 = vmax.xlane.f32.xlu1 %v1673_v12  ;;  %v2692_v13 = vpop.f32.mrf.mxu0  ;;  %v2926_v12 = vld [vmem:[#allocation18 + $0x4] ss:$12 sps:$4 sm:$0xff]  }
 0x586   :  { %v2927_v13 = vld [vmem:[#allocation18 + $0x38] ss:$12 sps:$4 sm:$0xff]  }
 0x587   :  { %v1662_v14 = vpop.f32.mrf.mxu0 }
 0x588   :  { %v1676_v15 = vsel %vm1666_vm1, %v1662_v14, -inf }
 0x589   :  { %1677 = vmax.xlane.f32.xlu1 %v1676_v15  ;;  %v2693_v16 = vpop.f32.mrf.mxu0  ;;  %v2928_v15 = vld [vmem:[#allocation18 + $0x20] ss:$12 sps:$4 sm:$0xff]  }
 0x58a   :  { %v2929_v16 = vld [vmem:[#allocation18 + $0x8] ss:$12 sps:$4 sm:$0xff]  }
 0x606   :  { %v1669_v17 = vpop.xlane.xlu0 %1668 }
 0x607   :  { %v1679_v19 = vsub.f32 %v1618_v1, %v1669_v17  ;;  %v2912_v1 = vld [vmem:[#allocation18 + $0x48] ss:$12 sps:$4 sm:$0xff]  }
 0x609   :  { %v1683_v20 = vmul.f32 1.442695, %v1679_v19 }
 0x60a   :  { %v1672_v21 = vpop.xlane.xlu0 %1671 }
 0x60b   :  { %2930 = vpow2.f32 %v1683_v20  ;;  %v1680_v22 = vsub.f32 %v1621_v7, %v1672_v21  ;;  %v2916_v7 = vld [vmem:[#allocation18 + $0x30] ss:$12 sps:$4 sm:$0xff]  }
 0x60d   :  { %v1685_v23 = vmul.f32 1.442695, %v1680_v22 }
 0x60e   :  { %v1675_v24 = vpop.xlane.xlu1 %1674 }
 0x60f   :  { %2932 = vpow2.f32 %v1685_v23  ;;  %v1681_v25 = vsub.f32 %v1659_v11, %v1675_v24  ;;  %v2920_v11 = vld [vmem:[#allocation18 + $0x18] ss:$12 sps:$4 sm:$0xff]  }
 0x611   :  { %v1687_v26 = vmul.f32 1.442695, %v1681_v25 }
 0x612   :  { %v1678_v28 = vpop.xlane.xlu1 %1677 }
 0x613   :  { %2934 = vpow2.f32 %v1687_v26  ;;  %v1682_v29 = vsub.f32 %v1662_v14, %v1678_v28  ;;  %v2924_v14 = vld [vmem:[#allocation18] ss:$12 sps:$4 sm:$0xff]  }
 0x615   :  { %v1689_v31 = vmul.f32 1.442695, %v1682_v29 }
 0x617   :  { %2936 = vpow2.f32 %v1689_v31  ;;  %v1835_v31 = vld [vmem:[%s3418_s12] sm:$0x7] }
 0x618   :  { %v2931_v30 = vpop.eup %2930 }
 0x619   :  { %v1691_v34 = vsel %vm1666_vm1, %v2931_v30, 0.0 }
 0x61a   :  { %1692 = vadd.xlane.f32.xlu0 %v1691_v34  ;;  %v1844_v34 = vrot.slane %v1835_v31, %v3291_v5 }
 0x61c   :  { %v2933_v37 = vpop.eup %2932 }
 0x61d   :  { %v1694_v10 = vsel %vm1666_vm1, %v2933_v37, 0.0 }
 0x61e   :  { %1695 = vadd.xlane.f32.xlu1 %v1694_v10 }
 0x620   :  { %v2935_v32 = vpop.eup %2934 }
 0x621   :  { %v1697_v33 = vsel %vm1666_vm1, %v2935_v32, 0.0 }
 0x622   :  { %1698 = vadd.xlane.f32.xlu0 %v1697_v33 }
 0x624   :  { %v2937_v35 = vpop.eup %2936 }
 0x625   :  { %v1700_v36 = vsel %vm1666_vm1, %v2937_v35, 0.0 }
 0x626   :  { %1701 = vadd.xlane.f32.xlu1 %v1700_v36 }
 0x6a3   :  { %v1693_v40 = vpop.xlane.xlu0 %1692 }
 0x6a4   :  { %2938 = vrcp.f32 %v1693_v40 }
 0x6a7   :  { %v1696_v41 = vpop.xlane.xlu1 %1695 }
 0x6a8   :  { %2940 = vrcp.f32 %v1696_v41 }
 0x6ab   :  { %v1699_v42 = vpop.xlane.xlu0 %1698 }
 0x6ac   :  { %2942 = vrcp.f32 %v1699_v42 }
 0x6af   :  { %v1702_v27 = vpop.xlane.xlu1 %1701 }
 0x6b0   :  { %2944 = vrcp.f32 %v1702_v27 }
 0x6b1   :  { %v2939_v43 = vpop.eup %2938 }
 0x6b2   :  { %v1707_v45 = vmul.f32 %v2939_v43, %v2931_v30  ;;  %v1840_v30 = vrot.slane %v1835_v31, %v3288_v3  ;;  %v1848_v3 = vrot.slane %v1835_v31, %v1343_v18 }
 0x6b5   :  { %v2941_v44 = vpop.eup %2940 }
 0x6b6   :  { %v1708_v46 = vmul.f32 %v2941_v44, %v2933_v37 }
 0x6b8   :  { %v1711_v48 = vpack.c.bf16 %v1708_v46, %v1707_v45 }
 0x6b9   :  { %v2943_v50 = vpop.eup %2942 }
 0x6ba   :  { %2697 = vmatmul.mubr.msk.bf16.vlgmr.msra.gmra.mxu1 %vm1666_vm1, %v1711_v48  ;;  %v1709_v54 = vmul.f32 %v2943_v50, %v2935_v32 }
 0x6bb   :  { %1981 = vmatpush1.bf16.msra.mxu1 %v2898_v47  ;;  %2012 = vmatprep.mubr.bf16.mxu1 %v3161_v0 }
 0x6bc   :  { %1982 = vmatprep.subr.bf16.mxu1 %v2903_v49 }
 0x6bd   :  { %v2945_v53 = vpop.eup %2944 }
 0x6be   :  { %v1710_v55 = vmul.f32 %v2945_v53, %v2937_v35 }
 0x6bf   :  { %1983 = vmatpush1.bf16.msra.mxu1 %v2901_v51 }
 0x6c0   :  { %v1712_v58 = vpack.c.bf16 %v1710_v55, %v1709_v54  ;;  %1984 = vmatprep.subr.bf16.mxu1 %v2906_v52 }
 0x6c2   :  { %2703 = vmatmul.mubr.msk.bf16.vlgmr.msra.gmra.mxu0 %vm1666_vm1, %v1712_v58 }
 0x6c3   :  { %1985 = vmatpush1.bf16.msra.mxu1 %v2904_v57  ;;  %2707 = vmatpush3.bf16.msra.mxu0 %v2907_v39 }
 0x6c4   :  { %1986 = vmatprep.subr.bf16.mxu1 %v2910_v59  ;;  %2708 = vmatprep.subr.bf16.mxu0 %v2911_v60 }
 0x6c7   :  { %1987 = vmatpush1.bf16.msra.mxu1 %v2908_v61  ;;  %2709 = vmatpush3.bf16.msra.mxu0 %v2911_v60 }
 0x6c8   :  { %1988 = vmatprep.subr.bf16.mxu1 %v2914_v62  ;;  %2710 = vmatprep.subr.bf16.mxu0 %v2915_v63 }
 0x6cb   :  { %1989 = vmatpush1.bf16.msra.mxu1 %v2912_v1  ;;  %2711 = vmatpush3.bf16.msra.mxu0 %v2915_v63 }
 0x6cc   :  { %1990 = vmatprep.subr.bf16.mxu1 %v2918_v4  ;;  %2712 = vmatprep.subr.bf16.mxu0 %v2919_v6 }
 0x6cf   :  { %1991 = vmatpush1.bf16.msra.mxu1 %v2916_v7  ;;  %2713 = vmatpush3.bf16.msra.mxu0 %v2919_v6 }
 0x6d0   :  { %1992 = vmatprep.subr.bf16.mxu1 %v2922_v8  ;;  %2714 = vmatprep.subr.bf16.mxu0 %v2923_v9 }
 0x6d3   :  { %1993 = vmatpush1.bf16.msra.mxu1 %v2920_v11  ;;  %2715 = vmatpush3.bf16.msra.mxu0 %v2923_v9 }
 0x6d4   :  { %1994 = vmatprep.subr.bf16.mxu1 %v2926_v12  ;;  %2716 = vmatprep.subr.bf16.mxu0 %v2927_v13 }
 0x6d7   :  { %1995 = vmatpush1.bf16.msra.mxu1 %v2924_v14  ;;  %2717 = vmatpush3.bf16.msra.mxu0 %v2927_v13 }
 0x6d8   :  { %2732 = vmatprep.subr.bf16.mxu1 %v3333_v56  ;;  %2718 = vmatprep.subr.bf16.mxu0 %v2928_v15 }
 0x6db   :  { %2719 = vmatpush3.bf16.msra.mxu0 %v2928_v15 }
 0x6dc   :  { %2720 = vmatprep.subr.bf16.mxu0 %v2929_v16 }
 0x6df   :  { %2721 = vmatpush3.bf16.msra.mxu0 %v2929_v16 }
 0x6e0   :  { %2726 = vmatprep.subr.bf16.mxu0 %v3333_v56 }
 0x77a   :  { %v1750_v17 = vpop.f32.mrf.mxu1 }
 0x77c   :  { %v2698_v19 = vpop.f32.mrf.mxu1 }
 0x77e   :  { %v1753_v20 = vpop.f32.mrf.mxu1 }
 0x77f   :  { %v1801_v21 = vpack.c.bf16 %v1753_v20, %v1750_v17 }
 0x780   :  { %v2699_v22 = vpop.f32.mrf.mxu1 }
 0x781   :  { %2013 = vmatmul.mubr.bf16.vlgmr.msra.gmra.mxu1 %v1801_v21  ;;  %2722 = vmatprep.mubr.bf16.mxu0 %v1801_v21 }
 0x782   :  { %v1794_v23 = vpop.f32.mrf.mxu0  ;;  %2021 = vmatprep.mubr.bf16.mxu1 %v3161_v0 }
 0x784   :  { %v2704_v24 = vpop.f32.mrf.mxu0 }
 0x786   :  { %v1797_v25 = vpop.f32.mrf.mxu0 }
 0x787   :  { %v1802_v26 = vpack.c.bf16 %v1797_v25, %v1794_v23 }
 0x788   :  { %v2705_v28 = vpop.f32.mrf.mxu0 }
 0x789   :  { %2022 = vmatmul.mubr.bf16.gmra.mxu1 %v1802_v26  ;;  %2723 = vmatmul.mubr.bf16.vlgmr.msra.gmra.mxu0 %v1802_v26 }
 0x78a   :  { %2728 = vmatprep.mubr.msk.bf16.mxu0 %vm3163_vm0, %v3333_v56  ;;  %2734 = vmatprep.mubr.msk.bf16.mxu1 %vm3163_vm0, %v3333_v56 }
 0x841   :  { %v2014_v29 = vpop.f32.mrf.mxu1 }
 0x842   :  { %v2201_v29 = vld [vmem:[%s3419_s13] sm:$0x1] }
 0x843   :  { %v2015_v0 = vpop.f32.mrf.mxu1 }
 0x844   :  { %v2016_v33 = vadd.f32 %v2015_v0, %v1844_v34 }
 0x845   :  { %v2017_v37 = vpop.f32.mrf.mxu1 }
 0x846   :  { %v2018_v10 = vadd.f32 %v2017_v37, %v1840_v30 }
 0x847   :  { %v2019_v32 = vpop.f32.mrf.mxu1 }
 0x848   :  { %v2020_v35 = vadd.f32 %v2019_v32, %v1844_v34  ;;  %v2080_v36 = vpack.c.bf16 %v2018_v10, %v2018_v10 }
 0x849   :  { %v2023_v38 = vpop.f32.mrf.mxu1  ;;  %v2724_v39 = vpop.f32.mrf.mxu0 }
 0x84a   :  { %v2082_v40 = vpack.c.bf16 %v2020_v35, %v2016_v33  ;;  %v2087_v27 = vshrl.u32 %v2080_v36, 16  ;;  %v2074_v18 = vadd.f32 %v2724_v39, %v1848_v3 }
 0x84b   :  { %v2024_v41 = vpop.f32.mrf.mxu1  ;;  %v2065_v42 = vpop.f32.mrf.mxu0 }
 0x84c   :  { %2727 = vmatpush3.bf16.xpose.msra.mxu0 %v2082_v40  ;;  %v2025_v47 = vadd.f32 %v2024_v41, %v1844_v34  ;;  %v2066_v48 = vadd.f32 %v2065_v42, %v1848_v3  ;;  %v2089_v51 = vrot.slane %v2087_v27, 3 }
 0x84d   :  { %v2026_v43 = vpop.f32.mrf.mxu1  ;;  %v2725_v44 = vpop.f32.mrf.mxu0  ;;  %2738 = vmatprep.subr.bf16.mxu0 %v3333_v56 }
 0x84e   :  { %v2027_v5 = vadd.f32 %v2026_v43, %v1840_v30  ;;  %v2077_v2 = vadd.f32 %v2725_v44, %v1848_v3 }
 0x84f   :  { %v2028_v45 = vpop.f32.mrf.mxu1  ;;  %v2068_v46 = vpop.f32.mrf.mxu0 }
 0x850   :  { %v2029_v49 = vadd.f32 %v2028_v45, %v1844_v34  ;;  %v2069_v50 = vadd.f32 %v2068_v46, %v1848_v3  ;;  %v2081_v52 = vpack.c.bf16 %v2027_v5, %v2027_v5  ;;  %v2085_v58 = vpack.c.bf16 %v2077_v2, %v2074_v18 }
 0x852   :  { %v2083_v53 = vpack.c.bf16 %v2029_v49, %v2025_v47  ;;  %v2084_v54 = vpack.c.bf16 %v2069_v50, %v2066_v48  ;;  %v2132_v55 = vshrl.u32 %v2081_v52, 16 }
 0x853   :  { %2729 = vmatmul.mubr.bf16.vlgmr.msra.gmra.mxu0 %v2089_v51 }
 0x854   :  { %2733 = vmatpush3.bf16.xpose.msra.mxu1 %v2083_v53  ;;  %2739 = vmatpush3.bf16.msra.mxu0 %v2084_v54  ;;  %v2134_v57 = vrot.slane %v2132_v55, 3 }
 0x855   :  { %2744 = vmatprep.subr.bf16.mxu1 %v3333_v56  ;;  %2740 = vmatprep.mubr.msk.bf16.mxu0 %vm3163_vm0, %v3333_v56 }
 0x85b   :  { %2735 = vmatmul.mubr.bf16.vlgmr.msra.gmra.mxu1 %v2134_v57 }
 0x85c   :  { %2745 = vmatpush3.bf16.msra.mxu1 %v2085_v58  ;;  %2746 = vmatprep.mubr.msk.bf16.mxu1 %vm3163_vm0, %v3333_v56 }
 0x913   :  { %v2125_v59 = vpop.f32.mrf.mxu0 }
 0x914   :  { %v2177_v60 = vsel %vm2176_vm2, %v2125_v59, -inf }
 0x915   :  { %2178 = vmax.xlane.f32.xlu0 %v2177_v60  ;;  %v2730_v61 = vpop.f32.mrf.mxu0 }
 0x917   :  { %v2128_v62 = vpop.f32.mrf.mxu0 }
 0x919   :  { %v2731_v63 = vpop.f32.mrf.mxu0 }
 0x91b   :  { %v2170_v1 = vpop.f32.mrf.mxu1 }
 0x91c   :  { %v2180_v4 = vsel %vm2176_vm2, %v2170_v1, -inf }
 0x91d   :  { %2181 = vmax.xlane.f32.xlu1 %v2180_v4  ;;  %v2736_v6 = vpop.f32.mrf.mxu1 }
 0x91f   :  { %v2173_v7 = vpop.f32.mrf.mxu1 }
 0x921   :  { %v2737_v8 = vpop.f32.mrf.mxu1 }
 0x99e   :  { %v2179_v9 = vpop.xlane.xlu0 %2178 }
 0x99f   :  { %v2183_v11 = vsub.f32 %v2125_v59, %v2179_v9 }
 0x9a1   :  { %v2185_v12 = vmul.f32 1.442695, %v2183_v11 }
 0x9a3   :  { %2946 = vpow2.f32 %v2185_v12 }
 0x9a6   :  { %v2182_v56 = vpop.xlane.xlu1 %2181 }
 0x9a7   :  { %v2184_v13 = vsub.f32 %v2170_v1, %v2182_v56 }
 0x9a9   :  { %v2187_v14 = vmul.f32 1.442695, %v2184_v13 }
 0x9ab   :  { %2948 = vpow2.f32 %v2187_v14 }
 0x9b0   :  { %v2947_v15 = vpop.eup %2946 }
 0x9b1   :  { %v2189_v16 = vsel %vm2176_vm2, %v2947_v15, 0.0 }
 0x9b2   :  { %2190 = vadd.xlane.f32.xlu0 %v2189_v16 }
 0x9b8   :  { %v2949_v17 = vpop.eup %2948 }
 0x9b9   :  { %v2192_v19 = vsel %vm2176_vm2, %v2949_v17, 0.0 }
 0x9ba   :  { %2193 = vadd.xlane.f32.xlu1 %v2192_v19 }
 0xa3b   :  { %v2191_v20 = vpop.xlane.xlu0 %2190 }
 0xa3c   :  { %2950 = vrcp.f32 %v2191_v20 }
 0xa43   :  { %v2194_v21 = vpop.xlane.xlu1 %2193 }
 0xa44   :  { %2952 = vrcp.f32 %v2194_v21 }
 0xa49   :  { %v2951_v22 = vpop.eup %2950 }
 0xa4a   :  { %v2197_v23 = vmul.f32 %v2951_v22, %v2947_v15 }
 0xa4c   :  { %v2199_v24 = vpack.c.bf16 %v2197_v23, %v2197_v23 }
 0xa4e   :  { %2741 = vmatmul.mubr.msk.bf16.vlgmr.msra.gmra.mxu0 %vm1666_vm1, %v2199_v24 }
 0xa51   :  { %v2953_v25 = vpop.eup %2952 }
 0xa52   :  { %v2198_v26 = vmul.f32 %v2953_v25, %v2949_v17 }
 0xa54   :  { %v2200_v28 = vpack.c.bf16 %v2198_v26, %v2198_v26 }
 0xa56   :  { %2747 = vmatmul.mubr.msk.bf16.vlgmr.msra.gmra.mxu1 %vm1666_vm1, %v2200_v28 }
 0xb0e   :  { %v2239_v31 = vpop.f32.mrf.mxu0 }
 0xb0f   :  { %v2240_v30 = vadd.f32 %v2239_v31, %v2201_v29 }
 0xb10   :  { %v2742_v0 = vpop.f32.mrf.mxu0 }
 0xb11   :  { %2288 = vst [vmem:[#allocation20] sm:$0x1] %v2240_v30 }
 0xb12   :  { %v2242_v34 = vpop.f32.mrf.mxu0 }
 0xb14   :  { %v2743_v37 = vpop.f32.mrf.mxu0 }
 0xb16   :  { %v2282_v10 = vpop.f32.mrf.mxu1 }
 0xb17   :  { %v2283_v32 = vadd.f32 %v2282_v10, %v2201_v29 }
 0xb18   :  { %v2748_v33 = vpop.f32.mrf.mxu1 }
 0xb19   :  { %2289 = vst [vmem:[#allocation20 + $0x1] sm:$0x1] %v2283_v32 }
 0xb1a   :  { %v2285_v35 = vpop.f32.mrf.mxu1 }
 0xb1b   :  { %3126 = shalt.err (!%p3123_p2)
}
 0xb1c   :  { %s3165_s13 = smov 16   ;;  %s3166_s0 = smov 1   ;;  %v2749_v36 = vpop.f32.mrf.mxu1 }
 0xb1d   :  { %2301 = dma.vmem_to_hbm [thread:$0]  %s2296_s28, 32, %s3420_s14, [#allocation8], %s3165_s13, %s3165_s13, %s3166_s0  }
 0xb1e   :  { %3145 = dma.done.wait [#allocation8], 32  }
 0xb1f   :  { %3146 = vsyncadd [#allocation8], 4294967264 }
 0xb20   :  { %2305 = vsyncpa [#allocation7], 1 }
 0xb21   :  { %2306 = vsyncpa [#allocation10], 1 }
 0xb22   :  { %2307 = vsyncpa [#allocation13], 1 }
 0xb23   :  { %2308 = vsyncpa [#allocation16], 1 }
 0xb24   :  { %2309 = vsyncpa [#allocation19], 1 }
 0xb25   :  { %2310 = vsyncpa [#allocation8], 1 }

</bundles_post_ra>
